<compile_context>
chip_gen: v5e
topology: v5e:2x2
jax: 0.10.0
libtpu: 0.0.40
codegen_flags: <defaults>
</compile_context>

<pallas_src>
import functools

import jax
import jax.numpy as jnp
from jax import lax
from jax.experimental import pallas as pl
from jax.experimental.pallas import tpu as pltpu


def _round_up(x, m):
    return (x + m - 1) // m * m


# ----------------------------------------------------------------------------
# RBF (Gaussian multi-kernel) MMD: single pass, grid over feature-dim tiles.
# ----------------------------------------------------------------------------
def _rbf_mmd_kernel(src_ref, tgt_ref, loss_ref,
                    gss_ref, gst_ref, gtt_ref, sqs_ref, sqt_ref, *,
                    batch_size, kernel_mul, kernel_num, use_bf16_gram):
    k = pl.program_id(0)
    nk = pl.num_programs(0)

    @pl.when(k == 0)
    def _init():
        gss_ref[...] = jnp.zeros_like(gss_ref)
        gst_ref[...] = jnp.zeros_like(gst_ref)
        gtt_ref[...] = jnp.zeros_like(gtt_ref)
        sqs_ref[...] = jnp.zeros_like(sqs_ref)
        sqt_ref[...] = jnp.zeros_like(sqt_ref)

    s = src_ref[...].astype(jnp.float32)          # (B, tk)
    t = tgt_ref[...].astype(jnp.float32)          # (B, tk)

    # Row squared norms (exact f32 accumulation on the VPU).
    sqs_ref[...] += jnp.sum(s * s, axis=-1, keepdims=True)
    sqt_ref[...] += jnp.sum(t * t, axis=-1, keepdims=True)

    # Gram quadrants on the MXU; optional bf16 feed (2x MXU rate on v6e/v7x),
    # accumulation is always f32.
    if use_bf16_gram:
        sm, tm = s.astype(jnp.bfloat16), t.astype(jnp.bfloat16)
    else:
        sm, tm = s, t
    dn = (((1,), (1,)), ((), ()))                 # contract feature dim: A @ B^T
    gss_ref[...] += lax.dot_general(sm, sm, dn, preferred_element_type=jnp.float32)
    gst_ref[...] += lax.dot_general(sm, tm, dn, preferred_element_type=jnp.float32)
    gtt_ref[...] += lax.dot_general(tm, tm, dn, preferred_element_type=jnp.float32)

    @pl.when(k == nk - 1)
    def _finalize():
        b = batch_size
        n = 2 * b
        g_ss, g_st, g_tt = gss_ref[...], gst_ref[...], gtt_ref[...]
        sq_s, sq_t = sqs_ref[...], sqt_ref[...]            # (B, 1)

        # sum over the full N x N L2 matrix, computed algebraically:
        #   sum(L2) = 2N * sum_i ||x_i||^2 - 2 * sum_ij <x_i, x_j>
        sum_sq = jnp.sum(sq_s) + jnp.sum(sq_t)
        sum_gram = jnp.sum(g_ss) + jnp.sum(g_tt) + 2.0 * jnp.sum(g_st)
        sum_l2 = 2.0 * float(n) * sum_sq - 2.0 * sum_gram

        bandwidth = sum_l2 / float(n * n - n)
        bandwidth = bandwidth / (kernel_mul ** (kernel_num // 2))
        bandwidth = jnp.maximum(bandwidth, 1e-12)          # guard degenerate inputs
        neg_inv0 = -1.0 / bandwidth                        # hoisted scalar reciprocal

        # Pairwise squared distances per quadrant; clamp FP-cancellation negatives.
        l2_ss = jnp.maximum(sq_s + jnp.transpose(sq_s) - 2.0 * g_ss, 0.0)
        l2_tt = jnp.maximum(sq_t + jnp.transpose(sq_t) - 2.0 * g_tt, 0.0)
        l2_st = jnp.maximum(sq_s + jnp.transpose(sq_t) - 2.0 * g_st, 0.0)

        def multiscale_sum(l2):
            if kernel_mul == 2.0:
                # exp once, each wider bandwidth via sqrt:
                #   exp(-l2/(2^i * bw)) = sqrt^i(exp(-l2/bw))
                e = jnp.exp(l2 * neg_inv0)
                tot = jnp.sum(e)
                for _ in range(kernel_num - 1):
                    e = jnp.sqrt(e)
                    tot = tot + jnp.sum(e)
                return tot
            tot = jnp.float32(0.0)
            for i in range(kernel_num):
                tot = tot + jnp.sum(jnp.exp(l2 * (neg_inv0 / (kernel_mul ** i))))
            return tot

        s_ss = multiscale_sum(l2_ss)
        s_tt = multiscale_sum(l2_tt)
        s_st = multiscale_sum(l2_st)      # == sum of the YX quadrant by symmetry

        # XX + YY - XY - YX, each a mean over B*B entries.
        loss_ref[0, 0] = (s_ss + s_tt - 2.0 * s_st) / float(b * b)


# ----------------------------------------------------------------------------
# Linear MMD (linear_mmd2), tiled over D with a running scalar accumulator.
# ----------------------------------------------------------------------------
def _linear_mmd_kernel(src_ref, tgt_ref, loss_ref, acc_ref):
    k = pl.program_id(0)

    @pl.when(k == 0)
    def _init():
        acc_ref[...] = jnp.zeros_like(acc_ref)

    fx = src_ref[...].astype(jnp.float32)
    fy = tgt_ref[...].astype(jnp.float32)
    # Per-feature mean difference for this D tile (means are per-feature, so
    # the sum of squared deltas is additive across D tiles).
    delta = jnp.mean(fx - fy, axis=0, keepdims=True)     # (1, tk)
    acc_ref[...] += jnp.sum(delta * delta)

    @pl.when(k == pl.num_programs(0) - 1)
    def _finalize():
        loss_ref[0, 0] = jnp.sum(acc_ref[...])


# ----------------------------------------------------------------------------
# Wrapper mirroring MMD_loss.forward
# ----------------------------------------------------------------------------
class MMDLossPallas:
    def __init__(self, kernel_type="rbf", kernel_mul=2.0, kernel_num=5,
                 block_d=2048, use_bf16_gram=False):
        self.kernel_type = kernel_type
        self.kernel_mul = float(kernel_mul)
        self.kernel_num = int(kernel_num)
        self.fix_sigma = None  # reference default; dynamic bandwidth is used
        # TODO(synk): fix_sigma != None path not wired (reference default is None).
        self.block_d = int(block_d)
        self.use_bf16_gram = bool(use_bf16_gram)

    def _choose_tk(self, d, b):
        """Largest lane-dense feature tile within a per-tile VMEM budget."""
        # Target <= ~2 MiB per (b, tk) f32 input tile (double-buffered x2 inputs).
        budget_cols = max(512, (2 * 1024 * 1024) // (4 * max(b, 8)))
        budget_cols = max(128, (budget_cols // 128) * 128)
        cap = max(128, min(self.block_d, budget_cols))
        d128 = _round_up(d, 128)
        if d128 <= cap:
            return d128                      # single tile covers padded D
        if d % 128 == 0:
            # Prefer a tile that divides D exactly -> no host-side padding copy.
            for tk in range(cap, 127, -128):
                if d % tk == 0:
                    return tk
        return cap

    def _prep(self, source, target):
        if source.ndim == 4:
            source = source.reshape(source.shape[0], -1)
            target = target.reshape(target.shape[0], -1)
        source = source.astype(jnp.float32)
        target = target.astype(jnp.float32)
        b, d = source.shape
        tk = self._choose_tk(d, b)
        d_pad = _round_up(d, tk)
        if d_pad != d:
            # Zero-padding does not change Gram entries, row norms, or mean deltas.
            source = jnp.pad(source, ((0, 0), (0, d_pad - d)))
            target = jnp.pad(target, ((0, 0), (0, d_pad - d)))
        return source, target, tk, d_pad

    def __call__(self, source, target):
        source, target, tk, d_pad = self._prep(source, target)
        b = source.shape[0]
        nk = d_pad // tk

        # Explicit VMEM budget: double-buffered (B, tk) f32 tiles for both
        # inputs plus small accumulator scratch and headroom.
        tile_bytes = b * tk * 4
        scratch_bytes = 3 * b * b * 4 + 2 * b * 128 * 4
        vmem_limit = int(min(
            64 * 1024 * 1024,
            max(8 * 1024 * 1024, 8 * tile_bytes + scratch_bytes + 4 * 1024 * 1024)))

        in_specs = [pl.BlockSpec((b, tk), lambda k: (0, k)),
                    pl.BlockSpec((b, tk), lambda k: (0, k))]
        out_specs = pl.BlockSpec((1, 1), lambda k: (0, 0),
                                 memory_space=pltpu.MemorySpace.SMEM)
        cparams = pltpu.CompilerParams(
            dimension_semantics=("arbitrary",),   # D-tile reduction axis
            vmem_limit_bytes=vmem_limit)

        if self.kernel_type == "linear":
            out = pl.pallas_call(
                _linear_mmd_kernel,
                out_shape=jax.ShapeDtypeStruct((1, 1), jnp.float32),
                grid_spec=pltpu.PrefetchScalarGridSpec(
                    num_scalar_prefetch=0,
                    grid=(nk,),
                    in_specs=in_specs,
                    out_specs=out_specs,
                    scratch_shapes=[pltpu.VMEM((1, 1), jnp.float32)]),
                compiler_params=cparams,
            )(source, target)
            return out[0, 0]

        elif self.kernel_type == "rbf":
            kernel = functools.partial(
                _rbf_mmd_kernel,
                batch_size=b,
                kernel_mul=self.kernel_mul,
                kernel_num=self.kernel_num,
                use_bf16_gram=self.use_bf16_gram)
            out = pl.pallas_call(
                kernel,
                out_shape=jax.ShapeDtypeStruct((1, 1), jnp.float32),
                grid_spec=pltpu.PrefetchScalarGridSpec(
                    num_scalar_prefetch=0,
                    grid=(nk,),
                    in_specs=in_specs,
                    out_specs=out_specs,
                    scratch_shapes=[pltpu.VMEM((b, b), jnp.float32),    # SS Gram
                                    pltpu.VMEM((b, b), jnp.float32),    # ST Gram
                                    pltpu.VMEM((b, b), jnp.float32),    # TT Gram
                                    pltpu.VMEM((b, 1), jnp.float32),    # ||s_i||^2
                                    pltpu.VMEM((b, 1), jnp.float32)]),  # ||t_i||^2
                compiler_params=cparams,
            )(source, target)
            return out[0, 0]

        else:
            raise ValueError(f"unknown kernel_type {self.kernel_type}")


# ----------------------------------------------------------------------------
# Pure-JAX references (mirror the PyTorch code) for correctness checks
# ----------------------------------------------------------------------------
def _rbf_mmd_ref(source, target, kernel_mul=2.0, kernel_num=5):
    source = source.reshape(source.shape[0], -1).astype(jnp.float32)
    target = target.reshape(target.shape[0], -1).astype(jnp.float32)
    b = source.shape[0]
    total = jnp.concatenate([source, target], axis=0)
    n = total.shape[0]
    diff = total[None, :, :] - total[:, None, :]
    l2 = jnp.sum(diff * diff, axis=2)
    bandwidth = jnp.sum(l2) / (n * n - n)
    bandwidth = bandwidth / (kernel_mul ** (kernel_num // 2))
    kernels = sum(jnp.exp(-l2 / (bandwidth * kernel_mul ** i))
                  for i in range(kernel_num))
    xx = jnp.mean(kernels[:b, :b]); yy = jnp.mean(kernels[b:, b:])
    xy = jnp.mean(kernels[:b, b:]); yx = jnp.mean(kernels[b:, :b])
    return xx + yy - xy - yx


def _linear_mmd_ref(source, target):
    source = source.reshape(source.shape[0], -1).astype(jnp.float32)
    target = target.reshape(target.shape[0], -1).astype(jnp.float32)
    delta = jnp.mean(source, axis=0) - jnp.mean(target, axis=0)
    return jnp.sum(delta * delta)


if __name__ == "__main__":
    key = jax.random.PRNGKey(0)
    k_src, k_tgt = jax.random.split(key)
    # NCHW inputs, as the PyTorch module would receive. D = 4*16*16 = 1024.
    source = jax.random.normal(k_src, (2, 4, 16, 16), dtype=jnp.float32)
    target = 0.5 * jax.random.normal(k_tgt, (2, 4, 16, 16), dtype=jnp.float32) + 0.1

    mmd = MMDLossPallas(kernel_type="rbf", kernel_mul=2.0, kernel_num=5)
    loss = jax.block_until_ready(mmd(source, target))
    ref = _rbf_mmd_ref(source, target)
    assert jnp.isfinite(loss), "non-finite rbf loss"
    assert jnp.allclose(loss, ref, rtol=1e-4, atol=1e-4), (loss, ref)

    # Exercise the multi-tile path too (D split over several feature tiles).
    mmd_tiled = MMDLossPallas(kernel_type="rbf", block_d=512)
    loss_tiled = jax.block_until_ready(mmd_tiled(source, target))
    assert jnp.allclose(loss_tiled, ref, rtol=1e-4, atol=1e-4), (loss_tiled, ref)

    lin = jax.block_until_ready(MMDLossPallas(kernel_type="linear")(source, target))
    lin_ref = _linear_mmd_ref(source, target)
    assert jnp.isfinite(lin), "non-finite linear loss"
    assert jnp.allclose(lin, lin_ref, rtol=1e-4, atol=1e-4), (lin, lin_ref)

    print("KERNEL_OK")
</pallas_src>

<mosaic_0001>
module attributes {stable_mosaic.version = 11 : i64} {
  func.func @_rbf_mmd_kernel(%arg0: i32, %arg1: memref<2x1024xf32, #tpu.memory_space<vmem>>, %arg2: memref<2x1024xf32, #tpu.memory_space<vmem>>, %arg3: memref<1x1xf32, #tpu.memory_space<smem>>, %arg4: memref<2x2xf32, #tpu.memory_space<vmem>>, %arg5: memref<2x2xf32, #tpu.memory_space<vmem>>, %arg6: memref<2x2xf32, #tpu.memory_space<vmem>>, %arg7: memref<2x1xf32, #tpu.memory_space<vmem>>, %arg8: memref<2x1xf32, #tpu.memory_space<vmem>>) attributes {dimension_semantics = [#tpu.dimension_semantics<arbitrary>], iteration_bounds = array<i64: 1>, scalar_prefetch = 0 : i64, scratch_operands = 5 : i64, tpu.core_type = #tpu.core_type<tc>, window_params = [{transform_indices = @transform_0, window_bounds = array<i64: 2, 1024>}, {transform_indices = @transform_1, window_bounds = array<i64: 2, 1024>}, {transform_indices = @transform_2, window_bounds = array<i64: 1, 1>}]} {
    %c0_i32 = arith.constant 0 : i32
    %0 = arith.cmpi eq, %arg0, %c0_i32 : i32
    %1 = arith.extui %0 : i1 to i32
    %c0_i32_0 = arith.constant 0 : i32
    %2 = arith.cmpi ne, %1, %c0_i32_0 : i32
    scf.if %2 {
      %cst_30 = arith.constant 0.000000e+00 : f32
      %32 = vector.broadcast %cst_30 : f32 to vector<2x2xf32>
      %c0_31 = arith.constant 0 : index
      %c0_32 = arith.constant 0 : index
      %33 = vector.load %arg4[%c0_31, %c0_32] : memref<2x2xf32, #tpu.memory_space<vmem>>, vector<2x2xf32>
      tpu.vector_store %arg4[%c0_31, %c0_32], %32 {strides = array<i32>} : memref<2x2xf32, #tpu.memory_space<vmem>>, vector<2x2xf32>,
      %cst_33 = arith.constant 0.000000e+00 : f32
      %34 = vector.broadcast %cst_33 : f32 to vector<2x2xf32>
      %c0_34 = arith.constant 0 : index
      %c0_35 = arith.constant 0 : index
      %35 = vector.load %arg5[%c0_34, %c0_35] : memref<2x2xf32, #tpu.memory_space<vmem>>, vector<2x2xf32>
      tpu.vector_store %arg5[%c0_34, %c0_35], %34 {strides = array<i32>} : memref<2x2xf32, #tpu.memory_space<vmem>>, vector<2x2xf32>,
      %cst_36 = arith.constant 0.000000e+00 : f32
      %36 = vector.broadcast %cst_36 : f32 to vector<2x2xf32>
      %c0_37 = arith.constant 0 : index
      %c0_38 = arith.constant 0 : index
      %37 = vector.load %arg6[%c0_37, %c0_38] : memref<2x2xf32, #tpu.memory_space<vmem>>, vector<2x2xf32>
      tpu.vector_store %arg6[%c0_37, %c0_38], %36 {strides = array<i32>} : memref<2x2xf32, #tpu.memory_space<vmem>>, vector<2x2xf32>,
      %cst_39 = arith.constant 0.000000e+00 : f32
      %38 = vector.broadcast %cst_39 : f32 to vector<2x1xf32>
      %c0_40 = arith.constant 0 : index
      %c0_41 = arith.constant 0 : index
      %39 = vector.load %arg7[%c0_40, %c0_41] : memref<2x1xf32, #tpu.memory_space<vmem>>, vector<2x1xf32>
      tpu.vector_store %arg7[%c0_40, %c0_41], %38 {strides = array<i32>} : memref<2x1xf32, #tpu.memory_space<vmem>>, vector<2x1xf32>,
      %cst_42 = arith.constant 0.000000e+00 : f32
      %40 = vector.broadcast %cst_42 : f32 to vector<2x1xf32>
      %c0_43 = arith.constant 0 : index
      %c0_44 = arith.constant 0 : index
      %41 = vector.load %arg8[%c0_43, %c0_44] : memref<2x1xf32, #tpu.memory_space<vmem>>, vector<2x1xf32>
      tpu.vector_store %arg8[%c0_43, %c0_44], %40 {strides = array<i32>} : memref<2x1xf32, #tpu.memory_space<vmem>>, vector<2x1xf32>,
    } else {
    }
    %c0 = arith.constant 0 : index
    %c0_1 = arith.constant 0 : index
    %3 = vector.load %arg1[%c0, %c0_1] : memref<2x1024xf32, #tpu.memory_space<vmem>>, vector<2x1024xf32>
    %c0_2 = arith.constant 0 : index
    %c0_3 = arith.constant 0 : index
    %4 = vector.load %arg2[%c0_2, %c0_3] : memref<2x1024xf32, #tpu.memory_space<vmem>>, vector<2x1024xf32>
    %c0_4 = arith.constant 0 : index
    %c0_5 = arith.constant 0 : index
    %5 = vector.load %arg7[%c0_4, %c0_5] : memref<2x1xf32, #tpu.memory_space<vmem>>, vector<2x1xf32>
    %6 = arith.mulf %3, %3 : vector<2x1024xf32>
    %cst = arith.constant dense<0.000000e+00> : vector<2xf32>
    %7 = vector.multi_reduction <add>, %6, %cst [1] : vector<2x1024xf32> to vector<2xf32>
    %8 = vector.shape_cast %7 : vector<2xf32> to vector<2x1xf32>
    %9 = arith.addf %5, %8 : vector<2x1xf32>
    %c0_6 = arith.constant 0 : index
    %c0_7 = arith.constant 0 : index
    %10 = vector.load %arg7[%c0_6, %c0_7] : memref<2x1xf32, #tpu.memory_space<vmem>>, vector<2x1xf32>
    tpu.vector_store %arg7[%c0_6, %c0_7], %9 {strides = array<i32>} : memref<2x1xf32, #tpu.memory_space<vmem>>, vector<2x1xf32>,
    %c0_8 = arith.constant 0 : index
    %c0_9 = arith.constant 0 : index
    %11 = vector.load %arg8[%c0_8, %c0_9] : memref<2x1xf32, #tpu.memory_space<vmem>>, vector<2x1xf32>
    %12 = arith.mulf %4, %4 : vector<2x1024xf32>
    %cst_10 = arith.constant dense<0.000000e+00> : vector<2xf32>
    %13 = vector.multi_reduction <add>, %12, %cst_10 [1] : vector<2x1024xf32> to vector<2xf32>
    %14 = vector.shape_cast %13 : vector<2xf32> to vector<2x1xf32>
    %15 = arith.addf %11, %14 : vector<2x1xf32>
    %c0_11 = arith.constant 0 : index
    %c0_12 = arith.constant 0 : index
    %16 = vector.load %arg8[%c0_11, %c0_12] : memref<2x1xf32, #tpu.memory_space<vmem>>, vector<2x1xf32>
    tpu.vector_store %arg8[%c0_11, %c0_12], %15 {strides = array<i32>} : memref<2x1xf32, #tpu.memory_space<vmem>>, vector<2x1xf32>,
    %c0_13 = arith.constant 0 : index
    %c0_14 = arith.constant 0 : index
    %17 = vector.load %arg4[%c0_13, %c0_14] : memref<2x2xf32, #tpu.memory_space<vmem>>, vector<2x2xf32>
    %cst_15 = arith.constant dense<0.000000e+00> : vector<2x2xf32>
    %18 = tpu.matmul %3, %3, %cst_15 {dimension_numbers = #tpu.dot_dimension_numbers<[1], [1], [0], [0], [0, 0, 1, 0], [], []>} : vector<2x1024xf32>, vector<2x1024xf32>, vector<2x2xf32> -> vector<2x2xf32>
    %19 = arith.addf %17, %18 : vector<2x2xf32>
    %c0_16 = arith.constant 0 : index
    %c0_17 = arith.constant 0 : index
    %20 = vector.load %arg4[%c0_16, %c0_17] : memref<2x2xf32, #tpu.memory_space<vmem>>, vector<2x2xf32>
    tpu.vector_store %arg4[%c0_16, %c0_17], %19 {strides = array<i32>} : memref<2x2xf32, #tpu.memory_space<vmem>>, vector<2x2xf32>,
    %c0_18 = arith.constant 0 : index
    %c0_19 = arith.constant 0 : index
    %21 = vector.load %arg5[%c0_18, %c0_19] : memref<2x2xf32, #tpu.memory_space<vmem>>, vector<2x2xf32>
    %cst_20 = arith.constant dense<0.000000e+00> : vector<2x2xf32>
    %22 = tpu.matmul %3, %4, %cst_20 {dimension_numbers = #tpu.dot_dimension_numbers<[1], [1], [0], [0], [0, 0, 1, 0], [], []>} : vector<2x1024xf32>, vector<2x1024xf32>, vector<2x2xf32> -> vector<2x2xf32>
    %23 = arith.addf %21, %22 : vector<2x2xf32>
    %c0_21 = arith.constant 0 : index
    %c0_22 = arith.constant 0 : index
    %24 = vector.load %arg5[%c0_21, %c0_22] : memref<2x2xf32, #tpu.memory_space<vmem>>, vector<2x2xf32>
    tpu.vector_store %arg5[%c0_21, %c0_22], %23 {strides = array<i32>} : memref<2x2xf32, #tpu.memory_space<vmem>>, vector<2x2xf32>,
    %c0_23 = arith.constant 0 : index
    %c0_24 = arith.constant 0 : index
    %25 = vector.load %arg6[%c0_23, %c0_24] : memref<2x2xf32, #tpu.memory_space<vmem>>, vector<2x2xf32>
    %cst_25 = arith.constant dense<0.000000e+00> : vector<2x2xf32>
    %26 = tpu.matmul %4, %4, %cst_25 {dimension_numbers = #tpu.dot_dimension_numbers<[1], [1], [0], [0], [0, 0, 1, 0], [], []>} : vector<2x1024xf32>, vector<2x1024xf32>, vector<2x2xf32> -> vector<2x2xf32>
    %27 = arith.addf %25, %26 : vector<2x2xf32>
    %c0_26 = arith.constant 0 : index
    %c0_27 = arith.constant 0 : index
    %28 = vector.load %arg6[%c0_26, %c0_27] : memref<2x2xf32, #tpu.memory_space<vmem>>, vector<2x2xf32>
    tpu.vector_store %arg6[%c0_26, %c0_27], %27 {strides = array<i32>} : memref<2x2xf32, #tpu.memory_space<vmem>>, vector<2x2xf32>,
    %c0_i32_28 = arith.constant 0 : i32
    %29 = arith.cmpi eq, %arg0, %c0_i32_28 : i32
    %30 = arith.extui %29 : i1 to i32
    %c0_i32_29 = arith.constant 0 : i32
    %31 = arith.cmpi ne, %30, %c0_i32_29 : i32
    scf.if %31 {
      %c0_30 = arith.constant 0 : index
      %c0_31 = arith.constant 0 : index
      %32 = vector.load %arg4[%c0_30, %c0_31] : memref<2x2xf32, #tpu.memory_space<vmem>>, vector<2x2xf32>
      %c0_32 = arith.constant 0 : index
      %c0_33 = arith.constant 0 : index
      %33 = vector.load %arg5[%c0_32, %c0_33] : memref<2x2xf32, #tpu.memory_space<vmem>>, vector<2x2xf32>
      %c0_34 = arith.constant 0 : index
      %c0_35 = arith.constant 0 : index
      %34 = vector.load %arg6[%c0_34, %c0_35] : memref<2x2xf32, #tpu.memory_space<vmem>>, vector<2x2xf32>
      %c0_36 = arith.constant 0 : index
      %c0_37 = arith.constant 0 : index
      %35 = vector.load %arg7[%c0_36, %c0_37] : memref<2x1xf32, #tpu.memory_space<vmem>>, vector<2x1xf32>
      %c0_38 = arith.constant 0 : index
      %c0_39 = arith.constant 0 : index
      %36 = vector.load %arg8[%c0_38, %c0_39] : memref<2x1xf32, #tpu.memory_space<vmem>>, vector<2x1xf32>
      %37 = vector.shape_cast %35 : vector<2x1xf32> to vector<1x2x1xf32>
      %cst_40 = arith.constant dense<0.000000e+00> : vector<1xf32>
      %38 = vector.multi_reduction <add>, %37, %cst_40 [1, 2] : vector<1x2x1xf32> to vector<1xf32>
      %39 = vector.shape_cast %38 : vector<1xf32> to vector<1x1x1xf32>
      %40 = vector.extract %39[0, 0, 0] : f32 from vector<1x1x1xf32>
      %41 = vector.shape_cast %36 : vector<2x1xf32> to vector<1x2x1xf32>
      %cst_41 = arith.constant dense<0.000000e+00> : vector<1xf32>
      %42 = vector.multi_reduction <add>, %41, %cst_41 [1, 2] : vector<1x2x1xf32> to vector<1xf32>
      %43 = vector.shape_cast %42 : vector<1xf32> to vector<1x1x1xf32>
      %44 = vector.extract %43[0, 0, 0] : f32 from vector<1x1x1xf32>
      %45 = arith.addf %40, %44 : f32
      %46 = vector.shape_cast %32 : vector<2x2xf32> to vector<1x2x2xf32>
      %cst_42 = arith.constant dense<0.000000e+00> : vector<1xf32>
      %47 = vector.multi_reduction <add>, %46, %cst_42 [1, 2] : vector<1x2x2xf32> to vector<1xf32>
      %48 = vector.shape_cast %47 : vector<1xf32> to vector<1x1x1xf32>
      %49 = vector.extract %48[0, 0, 0] : f32 from vector<1x1x1xf32>
      %50 = vector.shape_cast %34 : vector<2x2xf32> to vector<1x2x2xf32>
      %cst_43 = arith.constant dense<0.000000e+00> : vector<1xf32>
      %51 = vector.multi_reduction <add>, %50, %cst_43 [1, 2] : vector<1x2x2xf32> to vector<1xf32>
      %52 = vector.shape_cast %51 : vector<1xf32> to vector<1x1x1xf32>
      %53 = vector.extract %52[0, 0, 0] : f32 from vector<1x1x1xf32>
      %54 = arith.addf %49, %53 : f32
      %55 = vector.shape_cast %33 : vector<2x2xf32> to vector<1x2x2xf32>
      %cst_44 = arith.constant dense<0.000000e+00> : vector<1xf32>
      %56 = vector.multi_reduction <add>, %55, %cst_44 [1, 2] : vector<1x2x2xf32> to vector<1xf32>
      %57 = vector.shape_cast %56 : vector<1xf32> to vector<1x1x1xf32>
      %58 = vector.extract %57[0, 0, 0] : f32 from vector<1x1x1xf32>
      %cst_45 = arith.constant 2.000000e+00 : f32
      %59 = arith.mulf %cst_45, %58 : f32
      %60 = arith.addf %54, %59 : f32
      %cst_46 = arith.constant 8.000000e+00 : f32
      %61 = arith.mulf %cst_46, %45 : f32
      %cst_47 = arith.constant 2.000000e+00 : f32
      %62 = arith.mulf %cst_47, %60 : f32
      %63 = arith.subf %61, %62 : f32
      %cst_48 = arith.constant 1.200000e+01 : f32
      %64 = arith.divf %63, %cst_48 : f32
      %cst_49 = arith.constant 4.000000e+00 : f32
      %65 = arith.divf %64, %cst_49 : f32
      %cst_50 = arith.constant 9.99999996E-13 : f32
      %66 = arith.maximumf %65, %cst_50 : f32
      %cst_51 = arith.constant -1.000000e+00 : f32
      %67 = arith.divf %cst_51, %66 : f32
      %68 = tpu.transpose %35, [1, 0] : vector<2x1xf32> -> vector<1x2xf32>
      %69 = vector.broadcast %35 : vector<2x1xf32> to vector<2x2xf32>
      %70 = vector.broadcast %68 : vector<1x2xf32> to vector<2x2xf32>
      %71 = arith.addf %69, %70 : vector<2x2xf32>
      %cst_52 = arith.constant 2.000000e+00 : f32
      %72 = vector.broadcast %cst_52 : f32 to vector<2x2xf32>
      %73 = arith.mulf %72, %32 : vector<2x2xf32>
      %74 = arith.subf %71, %73 : vector<2x2xf32>
      %cst_53 = arith.constant 0.000000e+00 : f32
      %75 = vector.broadcast %cst_53 : f32 to vector<2x2xf32>
      %76 = arith.maximumf %74, %75 : vector<2x2xf32>
      %77 = tpu.transpose %36, [1, 0] : vector<2x1xf32> -> vector<1x2xf32>
      %78 = vector.broadcast %36 : vector<2x1xf32> to vector<2x2xf32>
      %79 = vector.broadcast %77 : vector<1x2xf32> to vector<2x2xf32>
      %80 = arith.addf %78, %79 : vector<2x2xf32>
      %cst_54 = arith.constant 2.000000e+00 : f32
      %81 = vector.broadcast %cst_54 : f32 to vector<2x2xf32>
      %82 = arith.mulf %81, %34 : vector<2x2xf32>
      %83 = arith.subf %80, %82 : vector<2x2xf32>
      %cst_55 = arith.constant 0.000000e+00 : f32
      %84 = vector.broadcast %cst_55 : f32 to vector<2x2xf32>
      %85 = arith.maximumf %83, %84 : vector<2x2xf32>
      %86 = tpu.transpose %36, [1, 0] : vector<2x1xf32> -> vector<1x2xf32>
      %87 = vector.broadcast %35 : vector<2x1xf32> to vector<2x2xf32>
      %88 = vector.broadcast %86 : vector<1x2xf32> to vector<2x2xf32>
      %89 = arith.addf %87, %88 : vector<2x2xf32>
      %cst_56 = arith.constant 2.000000e+00 : f32
      %90 = vector.broadcast %cst_56 : f32 to vector<2x2xf32>
      %91 = arith.mulf %90, %33 : vector<2x2xf32>
      %92 = arith.subf %89, %91 : vector<2x2xf32>
      %cst_57 = arith.constant 0.000000e+00 : f32
      %93 = vector.broadcast %cst_57 : f32 to vector<2x2xf32>
      %94 = arith.maximumf %92, %93 : vector<2x2xf32>
      %95 = vector.broadcast %67 : f32 to vector<2x2xf32>
      %96 = arith.mulf %76, %95 : vector<2x2xf32>
      %97 = math.exp %96 : vector<2x2xf32>
      %98 = vector.shape_cast %97 : vector<2x2xf32> to vector<1x2x2xf32>
      %cst_58 = arith.constant dense<0.000000e+00> : vector<1xf32>
      %99 = vector.multi_reduction <add>, %98, %cst_58 [1, 2] : vector<1x2x2xf32> to vector<1xf32>
      %100 = vector.shape_cast %99 : vector<1xf32> to vector<1x1x1xf32>
      %101 = vector.extract %100[0, 0, 0] : f32 from vector<1x1x1xf32>
      %102 = math.sqrt %97 : vector<2x2xf32>
      %103 = vector.shape_cast %102 : vector<2x2xf32> to vector<1x2x2xf32>
      %cst_59 = arith.constant dense<0.000000e+00> : vector<1xf32>
      %104 = vector.multi_reduction <add>, %103, %cst_59 [1, 2] : vector<1x2x2xf32> to vector<1xf32>
      %105 = vector.shape_cast %104 : vector<1xf32> to vector<1x1x1xf32>
      %106 = vector.extract %105[0, 0, 0] : f32 from vector<1x1x1xf32>
      %107 = arith.addf %101, %106 : f32
      %108 = math.sqrt %102 : vector<2x2xf32>
      %109 = vector.shape_cast %108 : vector<2x2xf32> to vector<1x2x2xf32>
      %cst_60 = arith.constant dense<0.000000e+00> : vector<1xf32>
      %110 = vector.multi_reduction <add>, %109, %cst_60 [1, 2] : vector<1x2x2xf32> to vector<1xf32>
      %111 = vector.shape_cast %110 : vector<1xf32> to vector<1x1x1xf32>
      %112 = vector.extract %111[0, 0, 0] : f32 from vector<1x1x1xf32>
      %113 = arith.addf %107, %112 : f32
      %114 = math.sqrt %108 : vector<2x2xf32>
      %115 = vector.shape_cast %114 : vector<2x2xf32> to vector<1x2x2xf32>
      %cst_61 = arith.constant dense<0.000000e+00> : vector<1xf32>
      %116 = vector.multi_reduction <add>, %115, %cst_61 [1, 2] : vector<1x2x2xf32> to vector<1xf32>
      %117 = vector.shape_cast %116 : vector<1xf32> to vector<1x1x1xf32>
      %118 = vector.extract %117[0, 0, 0] : f32 from vector<1x1x1xf32>
      %119 = arith.addf %113, %118 : f32
      %120 = math.sqrt %114 : vector<2x2xf32>
      %121 = vector.shape_cast %120 : vector<2x2xf32> to vector<1x2x2xf32>
      %cst_62 = arith.constant dense<0.000000e+00> : vector<1xf32>
      %122 = vector.multi_reduction <add>, %121, %cst_62 [1, 2] : vector<1x2x2xf32> to vector<1xf32>
      %123 = vector.shape_cast %122 : vector<1xf32> to vector<1x1x1xf32>
      %124 = vector.extract %123[0, 0, 0] : f32 from vector<1x1x1xf32>
      %125 = arith.addf %119, %124 : f32
      %126 = vector.broadcast %67 : f32 to vector<2x2xf32>
      %127 = arith.mulf %85, %126 : vector<2x2xf32>
      %128 = math.exp %127 : vector<2x2xf32>
      %129 = vector.shape_cast %128 : vector<2x2xf32> to vector<1x2x2xf32>
      %cst_63 = arith.constant dense<0.000000e+00> : vector<1xf32>
      %130 = vector.multi_reduction <add>, %129, %cst_63 [1, 2] : vector<1x2x2xf32> to vector<1xf32>
      %131 = vector.shape_cast %130 : vector<1xf32> to vector<1x1x1xf32>
      %132 = vector.extract %131[0, 0, 0] : f32 from vector<1x1x1xf32>
      %133 = math.sqrt %128 : vector<2x2xf32>
      %134 = vector.shape_cast %133 : vector<2x2xf32> to vector<1x2x2xf32>
      %cst_64 = arith.constant dense<0.000000e+00> : vector<1xf32>
      %135 = vector.multi_reduction <add>, %134, %cst_64 [1, 2] : vector<1x2x2xf32> to vector<1xf32>
      %136 = vector.shape_cast %135 : vector<1xf32> to vector<1x1x1xf32>
      %137 = vector.extract %136[0, 0, 0] : f32 from vector<1x1x1xf32>
      %138 = arith.addf %132, %137 : f32
      %139 = math.sqrt %133 : vector<2x2xf32>
      %140 = vector.shape_cast %139 : vector<2x2xf32> to vector<1x2x2xf32>
      %cst_65 = arith.constant dense<0.000000e+00> : vector<1xf32>
      %141 = vector.multi_reduction <add>, %140, %cst_65 [1, 2] : vector<1x2x2xf32> to vector<1xf32>
      %142 = vector.shape_cast %141 : vector<1xf32> to vector<1x1x1xf32>
      %143 = vector.extract %142[0, 0, 0] : f32 from vector<1x1x1xf32>
      %144 = arith.addf %138, %143 : f32
      %145 = math.sqrt %139 : vector<2x2xf32>
      %146 = vector.shape_cast %145 : vector<2x2xf32> to vector<1x2x2xf32>
      %cst_66 = arith.constant dense<0.000000e+00> : vector<1xf32>
      %147 = vector.multi_reduction <add>, %146, %cst_66 [1, 2] : vector<1x2x2xf32> to vector<1xf32>
      %148 = vector.shape_cast %147 : vector<1xf32> to vector<1x1x1xf32>
      %149 = vector.extract %148[0, 0, 0] : f32 from vector<1x1x1xf32>
      %150 = arith.addf %144, %149 : f32
      %151 = math.sqrt %145 : vector<2x2xf32>
      %152 = vector.shape_cast %151 : vector<2x2xf32> to vector<1x2x2xf32>
      %cst_67 = arith.constant dense<0.000000e+00> : vector<1xf32>
      %153 = vector.multi_reduction <add>, %152, %cst_67 [1, 2] : vector<1x2x2xf32> to vector<1xf32>
      %154 = vector.shape_cast %153 : vector<1xf32> to vector<1x1x1xf32>
      %155 = vector.extract %154[0, 0, 0] : f32 from vector<1x1x1xf32>
      %156 = arith.addf %150, %155 : f32
      %157 = vector.broadcast %67 : f32 to vector<2x2xf32>
      %158 = arith.mulf %94, %157 : vector<2x2xf32>
      %159 = math.exp %158 : vector<2x2xf32>
      %160 = vector.shape_cast %159 : vector<2x2xf32> to vector<1x2x2xf32>
      %cst_68 = arith.constant dense<0.000000e+00> : vector<1xf32>
      %161 = vector.multi_reduction <add>, %160, %cst_68 [1, 2] : vector<1x2x2xf32> to vector<1xf32>
      %162 = vector.shape_cast %161 : vector<1xf32> to vector<1x1x1xf32>
      %163 = vector.extract %162[0, 0, 0] : f32 from vector<1x1x1xf32>
      %164 = math.sqrt %159 : vector<2x2xf32>
      %165 = vector.shape_cast %164 : vector<2x2xf32> to vector<1x2x2xf32>
      %cst_69 = arith.constant dense<0.000000e+00> : vector<1xf32>
      %166 = vector.multi_reduction <add>, %165, %cst_69 [1, 2] : vector<1x2x2xf32> to vector<1xf32>
      %167 = vector.shape_cast %166 : vector<1xf32> to vector<1x1x1xf32>
      %168 = vector.extract %167[0, 0, 0] : f32 from vector<1x1x1xf32>
      %169 = arith.addf %163, %168 : f32
      %170 = math.sqrt %164 : vector<2x2xf32>
      %171 = vector.shape_cast %170 : vector<2x2xf32> to vector<1x2x2xf32>
      %cst_70 = arith.constant dense<0.000000e+00> : vector<1xf32>
      %172 = vector.multi_reduction <add>, %171, %cst_70 [1, 2] : vector<1x2x2xf32> to vector<1xf32>
      %173 = vector.shape_cast %172 : vector<1xf32> to vector<1x1x1xf32>
      %174 = vector.extract %173[0, 0, 0] : f32 from vector<1x1x1xf32>
      %175 = arith.addf %169, %174 : f32
      %176 = math.sqrt %170 : vector<2x2xf32>
      %177 = vector.shape_cast %176 : vector<2x2xf32> to vector<1x2x2xf32>
      %cst_71 = arith.constant dense<0.000000e+00> : vector<1xf32>
      %178 = vector.multi_reduction <add>, %177, %cst_71 [1, 2] : vector<1x2x2xf32> to vector<1xf32>
      %179 = vector.shape_cast %178 : vector<1xf32> to vector<1x1x1xf32>
      %180 = vector.extract %179[0, 0, 0] : f32 from vector<1x1x1xf32>
      %181 = arith.addf %175, %180 : f32
      %182 = math.sqrt %176 : vector<2x2xf32>
      %183 = vector.shape_cast %182 : vector<2x2xf32> to vector<1x2x2xf32>
      %cst_72 = arith.constant dense<0.000000e+00> : vector<1xf32>
      %184 = vector.multi_reduction <add>, %183, %cst_72 [1, 2] : vector<1x2x2xf32> to vector<1xf32>
      %185 = vector.shape_cast %184 : vector<1xf32> to vector<1x1x1xf32>
      %186 = vector.extract %185[0, 0, 0] : f32 from vector<1x1x1xf32>
      %187 = arith.addf %181, %186 : f32
      %188 = arith.addf %125, %156 : f32
      %cst_73 = arith.constant 2.000000e+00 : f32
      %189 = arith.mulf %cst_73, %187 : f32
      %190 = arith.subf %188, %189 : f32
      %cst_74 = arith.constant 4.000000e+00 : f32
      %191 = arith.divf %190, %cst_74 : f32
      %c0_75 = arith.constant 0 : index
      %c0_76 = arith.constant 0 : index
      %192 = memref.load %arg3[%c0_75, %c0_76] : memref<1x1xf32, #tpu.memory_space<smem>>
      memref.store %191, %arg3[%c0_75, %c0_76] : memref<1x1xf32, #tpu.memory_space<smem>>
    } else {
    }
    return
  }
  func.func @transform_0(%arg0: i32) -> (i32, i32) {
    %c0_i32 = arith.constant 0 : i32
    %c0_i32_0 = arith.constant 0 : i32
    return %c0_i32, %arg0 : i32, i32
  }
  func.func @transform_1(%arg0: i32) -> (i32, i32) {
    %c0_i32 = arith.constant 0 : i32
    %c0_i32_0 = arith.constant 0 : i32
    return %c0_i32, %arg0 : i32, i32
  }
  func.func @transform_2(%arg0: i32) -> (i32, i32) {
    %c0_i32 = arith.constant 0 : i32
    %c0_i32_0 = arith.constant 0 : i32
    %c0_i32_1 = arith.constant 0 : i32
    return %c0_i32, %c0_i32_0 : i32, i32
  }
}

</mosaic_0001>

<bundles_post_ra>
// kernel: tpu_custom_call.1
= control target key start
LH: loop header
LB: loop body
LE: loop exit
PB: predicated region body
PF: predicated region fallthrough
CT: control target
= control target key end

     0   :  { %7 = vsyncpa [#allocation8], 0  ;;  %s1581_s0 = inlined_call_operand.hbm [shape: f32[2,1024], index: 0, kind: input, shape index: {}]   ;;  %s1582_s1 = inlined_call_operand.hbm [shape: f32[2,1024], index: 1, kind: input, shape index: {}]   ;;  %s1583_s2 = inlined_call_operand.hbm [shape: f32[1,1], index: 2, kind: output, shape index: {}]  }
   0x1   :  { %8 = vsyncpa [#allocation11], 0 }
   0x2   :  { %9 = vsyncpa [#allocation9], 0  ;;  %s15_s11 = sshll.u32 %s1581_s0, 4  ;;  %s1446_s12 = smov [#allocation7]   ;;  %s16_s11 = int_to_ptr.hbm [resolvable:$true] %s15_s11 }
   0x3   :  { %s17_s13 = sshll.u32 %s1446_s12, 4  ;;  %s26_s16 = sshll.u32 %s1582_s1, 4  ;;  %s18_s13 = int_to_ptr.vmem [resolvable:$true] %s17_s13  ;;  %s27_s16 = int_to_ptr.hbm [resolvable:$true] %s26_s16 }
   0x4   :  { %20 = dma.hbm_to_vmem [thread:$0]  %s16_s11, 256, %s18_s13, [#allocation8]  }
   0x5   :  { %s1447_s17 = smov [#allocation10]  }
   0x6   :  { %s28_s18 = sshll.u32 %s1447_s17, 4  ;;  %s29_s18 = int_to_ptr.vmem [resolvable:$true] %s28_s18 }
   0x7   :  { %31 = dma.hbm_to_vmem [thread:$0]  %s27_s16, 256, %s29_s18, [#allocation11]  }
   0x8   :  { %1440 = dma.done.wait [#allocation8], 256  }
   0x9   :  { %1441 = vsyncadd [#allocation8], 4294967040 }
   0xa   :  { %1442 = dma.done.wait [#allocation11], 256  }
   0xb   :  { %1443 = vsyncadd [#allocation11], 4294967040  ;;  %v1475_v0 = vld [vmem:[#allocation7] sm:$0xff]  ;;  %v1477_v1 = vld [vmem:[#allocation7 + $0x8] sm:$0xff]  ;;  %vm79_vm0 = vcmask 1041408   ;;  %vm48_vm1 = vcmask 1024  }
   0xc   :  { %v56_v2 = vmul.f32 %v1475_v0, %v1475_v0  ;;  %v57_v3 = vmul.f32 %v1477_v1, %v1477_v1  ;;  %v1483_v4 = vld [vmem:[#allocation10] sm:$0xff]  ;;  %v1487_v6 = vld [vmem:[#allocation10 + $0x8] sm:$0xff]  ;;  %vm44_vm2 = vcmask 9216   ;;  %s1452_s5 = smov 1e-12  }
   0xd   :  { %v101_v5 = vmul.f32 %v1483_v4, %v1483_v4  ;;  %v102_v11 = vmul.f32 %v1487_v6, %v1487_v6 }
   0xe   :  { %60 = vst [vmem:[#allocation1] ss:$4 sm:$0xff] %v56_v2 }
   0xf   :  { %62 = vst [vmem:[#allocation1 + $0x20] ss:$4 sm:$0xff] %v57_v3 }
  0x15   :  { %v63_v7 = vld.sshfl [vmem:[#allocation1] sm:$0xff pattern:$0x73625140]  ;;  %v64_v8 = vld.sshfl [vmem:[#allocation1 + $0x8] sm:$0xff pattern:$0x73625140] }
  0x16   :  { %v65_v9 = vld.sshfl [vmem:[#allocation1 + $0x10] sm:$0xff pattern:$0x73625140]  ;;  %v66_v10 = vld.sshfl [vmem:[#allocation1 + $0x18] sm:$0xff pattern:$0x73625140] }
  0x17   :  { %105 = vst [vmem:[#allocation1] ss:$4 sm:$0xff] %v101_v5  ;;  %v67_v12 = vld.sshfl [vmem:[#allocation1 + $0x20] sm:$0xff pattern:$0x73625140]  ;;  %v80_v16 = vsel %vm79_vm0, %v63_v7, 0.0 }
  0x18   :  { %v68_v13 = vld.sshfl [vmem:[#allocation1 + $0x28] sm:$0xff pattern:$0x73625140]  ;;  %v69_v14 = vld.sshfl [vmem:[#allocation1 + $0x30] sm:$0xff pattern:$0x73625140] }
  0x19   :  { %v70_v15 = vld.sshfl [vmem:[#allocation1 + $0x38] sm:$0xff pattern:$0x73625140]  ;;  %v81_v17 = vsel %vm79_vm0, %v64_v8, 0.0  ;;  %v83_v19 = vsel %vm79_vm0, %v65_v9, 0.0  ;;  %v85_v25 = vsel %vm79_vm0, %v66_v10, 0.0 }
  0x1a   :  { %107 = vst [vmem:[#allocation1 + $0x20] ss:$4 sm:$0xff] %v102_v11  ;;  %v82_v18 = vadd.f32 %v81_v17, %v80_v16  ;;  %v87_v26 = vsel %vm79_vm0, %v67_v12, 0.0  ;;  %v89_v33 = vsel %vm79_vm0, %v68_v13, 0.0  ;;  %v91_v36 = vsel %vm79_vm0, %v69_v14, 0.0 }
  0x1b   :  { %v93_v40 = vsel %vm79_vm0, %v70_v15, 0.0 }
  0x1c   :  { %v84_v20 = vadd.f32 %v83_v19, %v82_v18 }
  0x1e   :  { %v108_v21 = vld.sshfl [vmem:[#allocation1] sm:$0xff pattern:$0x73625140]  ;;  %v109_v22 = vld.sshfl [vmem:[#allocation1 + $0x8] sm:$0xff pattern:$0x73625140]  ;;  %v86_v29 = vadd.f32 %v85_v25, %v84_v20 }
  0x1f   :  { %v110_v23 = vld.sshfl [vmem:[#allocation1 + $0x10] sm:$0xff pattern:$0x73625140]  ;;  %v111_v24 = vld.sshfl [vmem:[#allocation1 + $0x18] sm:$0xff pattern:$0x73625140] }
  0x20   :  { %146 = vst [vmem:[#allocation1] ss:$4 sm:$0xff] %v1475_v0  ;;  %v88_v32 = vadd.f32 %v87_v26, %v86_v29  ;;  %v124_v34 = vsel %vm79_vm0, %v108_v21, 0.0  ;;  %v125_v35 = vsel %vm79_vm0, %v109_v22, 0.0  ;;  %v127_v38 = vsel %vm79_vm0, %v110_v23, 0.0 }
  0x21   :  { %v112_v27 = vld.sshfl [vmem:[#allocation1 + $0x20] sm:$0xff pattern:$0x73625140]  ;;  %v113_v28 = vld.sshfl [vmem:[#allocation1 + $0x28] sm:$0xff pattern:$0x73625140]  ;;  %v126_v37 = vadd.f32 %v125_v35, %v124_v34 }
  0x22   :  { %v114_v30 = vld.sshfl [vmem:[#allocation1 + $0x30] sm:$0xff pattern:$0x73625140]  ;;  %v115_v31 = vld.sshfl [vmem:[#allocation1 + $0x38] sm:$0xff pattern:$0x73625140]  ;;  %v90_v39 = vadd.f32 %v89_v33, %v88_v32 }
  0x23   :  { %148 = vst [vmem:[#allocation1 + $0x20] ss:$4 sm:$0xff] %v1477_v1  ;;  %v128_v41 = vadd.f32 %v127_v38, %v126_v37  ;;  %v129_v42 = vsel %vm79_vm0, %v111_v24, 0.0  ;;  %v131_v50 = vsel %vm79_vm0, %v112_v27, 0.0  ;;  %v133_v56 = vsel %vm79_vm0, %v113_v28, 0.0 }
  0x24   :  { %v92_v45 = vadd.f32 %v91_v36, %v90_v39  ;;  %v135_v57 = vsel %vm79_vm0, %v114_v30, 0.0  ;;  %v137_v59 = vsel %vm79_vm0, %v115_v31, 0.0 }
  0x25   :  { %v130_v48 = vadd.f32 %v129_v42, %v128_v41 }
  0x26   :  { %v94_v49 = vadd.f32 %v93_v40, %v92_v45 }
  0x27   :  { %v149_v43 = vld.sshfl [vmem:[#allocation1] sm:$0xff pattern:$0x73625140]  ;;  %v150_v44 = vld.sshfl [vmem:[#allocation1 + $0x8] sm:$0xff pattern:$0x73625140]  ;;  %v132_v53 = vadd.f32 %v131_v50, %v130_v48 }
  0x28   :  { %v151_v46 = vld.sshfl [vmem:[#allocation1 + $0x10] sm:$0xff pattern:$0x73625140]  ;;  %v152_v47 = vld.sshfl [vmem:[#allocation1 + $0x18] sm:$0xff pattern:$0x73625140]  ;;  %95 = vadd.xlane.f32.xlu0 %v94_v49 }
  0x29   :  { %165 = vst [vmem:[#allocation1] ss:$4 sm:$0xff] %v1475_v0  ;;  %v134_v58 = vadd.f32 %v133_v56, %v132_v53 }
  0x2a   :  { %v153_v51 = vld.sshfl [vmem:[#allocation1 + $0x20] sm:$0xff pattern:$0x73625140]  ;;  %v154_v52 = vld.sshfl [vmem:[#allocation1 + $0x28] sm:$0xff pattern:$0x73625140] }
  0x2b   :  { %v155_v54 = vld.sshfl [vmem:[#allocation1 + $0x30] sm:$0xff pattern:$0x73625140]  ;;  %v156_v55 = vld.sshfl [vmem:[#allocation1 + $0x38] sm:$0xff pattern:$0x73625140]  ;;  %v136_v60 = vadd.f32 %v135_v57, %v134_v58 }
  0x2c   :  { %167 = vst [vmem:[#allocation1 + $0x20] ss:$4 sm:$0xff] %v1477_v1 }
  0x2d   :  { %v138_v3 = vadd.f32 %v137_v59, %v136_v60 }
  0x30   :  { %v170_v61 = vld.sshfl [vmem:[#allocation1 + $0x10] sm:$0xff pattern:$0x73625140]  ;;  %v168_v62 = vld.sshfl [vmem:[#allocation1] sm:$0xff pattern:$0x73625140]  ;;  %139 = vadd.xlane.f32.xlu0 %v138_v3 }
  0x31   :  { %239 = vmatpush.xpose.msra.mxu2 %v170_v61  ;;  %199 = vmatpush.xpose.msra.mxu0 %v168_v62  ;;  %v171_v63 = vld.sshfl [vmem:[#allocation1 + $0x18] sm:$0xff pattern:$0x73625140]  ;;  %v169_v2 = vld.sshfl [vmem:[#allocation1 + $0x8] sm:$0xff pattern:$0x73625140] }
  0x32   :  { %259 = vmatpush.xpose.msra.mxu3 %v171_v63  ;;  %219 = vmatpush.xpose.msra.mxu1 %v169_v2  ;;  %348 = vst [vmem:[#allocation1] ss:$4 sm:$0xff] %v1475_v0 }
  0x33   :  { %v174_v5 = vld.sshfl [vmem:[#allocation1 + $0x30] sm:$0xff pattern:$0x73625140]  ;;  %v172_v7 = vld.sshfl [vmem:[#allocation1 + $0x20] sm:$0xff pattern:$0x73625140] }
  0x34   :  { %240 = vmatmul.f32.vlgmr.msra.gmra.mxu2 %v151_v46  ;;  %200 = vmatmul.f32.vlgmr.msra.gmra.mxu0 %v149_v43  ;;  %v175_v8 = vld.sshfl [vmem:[#allocation1 + $0x38] sm:$0xff pattern:$0x73625140]  ;;  %v173_v9 = vld.sshfl [vmem:[#allocation1 + $0x28] sm:$0xff pattern:$0x73625140] }
  0x35   :  { %260 = vmatmul.f32.vlgmr.msra.gmra.mxu3 %v152_v47  ;;  %220 = vmatmul.f32.vlgmr.msra.gmra.mxu1 %v150_v44  ;;  %350 = vst [vmem:[#allocation1 + $0x20] ss:$4 sm:$0xff] %v1477_v1 }
  0x36   :  { %319 = vmatpush.xpose.msrb.mxu2 %v174_v5  ;;  %279 = vmatpush.xpose.msrb.mxu0 %v172_v7 }
  0x37   :  { %339 = vmatpush.xpose.msrb.mxu3 %v175_v8  ;;  %299 = vmatpush.xpose.msrb.mxu1 %v173_v9 }
  0x39   :  { %v351_v10 = vld.sshfl [vmem:[#allocation1] sm:$0xff pattern:$0x73625140]  ;;  %v352_v11 = vld.sshfl [vmem:[#allocation1 + $0x8] sm:$0xff pattern:$0x73625140] }
  0x3a   :  { %v353_v12 = vld.sshfl [vmem:[#allocation1 + $0x10] sm:$0xff pattern:$0x73625140]  ;;  %v354_v13 = vld.sshfl [vmem:[#allocation1 + $0x18] sm:$0xff pattern:$0x73625140] }
  0x3b   :  { %369 = vst [vmem:[#allocation1] ss:$4 sm:$0xff] %v1483_v4 }
  0x3c   :  { %320 = vmatmul.f32.vlgmr.msrb.gmra.mxu2 %v155_v54  ;;  %v355_v0 = vld.sshfl [vmem:[#allocation1 + $0x20] sm:$0xff pattern:$0x73625140]  ;;  %v356_v14 = vld.sshfl [vmem:[#allocation1 + $0x28] sm:$0xff pattern:$0x73625140]  ;;  %280 = vmatmul.f32.vlgmr.msrb.gmra.mxu0 %v153_v51 }
  0x3d   :  { %v357_v15 = vld.sshfl [vmem:[#allocation1 + $0x30] sm:$0xff pattern:$0x73625140]  ;;  %v358_v16 = vld.sshfl [vmem:[#allocation1 + $0x38] sm:$0xff pattern:$0x73625140]  ;;  %340 = vmatmul.f32.vlgmr.msrb.gmra.mxu3 %v156_v55  ;;  %300 = vmatmul.f32.vlgmr.msrb.gmra.mxu1 %v154_v52 }
  0x3e   :  { %371 = vst [vmem:[#allocation1 + $0x20] ss:$4 sm:$0xff] %v1487_v6 }
  0x42   :  { %v374_v1 = vld.sshfl [vmem:[#allocation1 + $0x10] sm:$0xff pattern:$0x73625140]  ;;  %v372_v17 = vld.sshfl [vmem:[#allocation1] sm:$0xff pattern:$0x73625140] }
  0x43   :  { %443 = vmatpush.xpose.msra.mxu2 %v374_v1  ;;  %403 = vmatpush.xpose.msra.mxu0 %v372_v17  ;;  %v375_v18 = vld.sshfl [vmem:[#allocation1 + $0x18] sm:$0xff pattern:$0x73625140]  ;;  %v373_v19 = vld.sshfl [vmem:[#allocation1 + $0x8] sm:$0xff pattern:$0x73625140] }
  0x44   :  { %463 = vmatpush.xpose.msra.mxu3 %v375_v18  ;;  %423 = vmatpush.xpose.msra.mxu1 %v373_v19  ;;  %551 = vst [vmem:[#allocation1] ss:$4 sm:$0xff] %v1483_v4 }
  0x45   :  { %v378_v20 = vld.sshfl [vmem:[#allocation1 + $0x30] sm:$0xff pattern:$0x73625140]  ;;  %v376_v21 = vld.sshfl [vmem:[#allocation1 + $0x20] sm:$0xff pattern:$0x73625140] }
  0x46   :  { %444 = vmatmul.f32.vlgmr.msra.gmra.mxu2 %v353_v12  ;;  %404 = vmatmul.f32.vlgmr.msra.gmra.mxu0 %v351_v10  ;;  %v379_v22 = vld.sshfl [vmem:[#allocation1 + $0x38] sm:$0xff pattern:$0x73625140]  ;;  %v377_v23 = vld.sshfl [vmem:[#allocation1 + $0x28] sm:$0xff pattern:$0x73625140] }
  0x47   :  { %464 = vmatmul.f32.vlgmr.msra.gmra.mxu3 %v354_v13  ;;  %424 = vmatmul.f32.vlgmr.msra.gmra.mxu1 %v352_v11  ;;  %553 = vst [vmem:[#allocation1 + $0x20] ss:$4 sm:$0xff] %v1487_v6  ;;  %v1449_v10 = vmov 0  }
  0x48   :  { %523 = vmatpush.xpose.msrb.mxu2 %v378_v20  ;;  %483 = vmatpush.xpose.msrb.mxu0 %v376_v21 }
  0x49   :  { %543 = vmatpush.xpose.msrb.mxu3 %v379_v22  ;;  %503 = vmatpush.xpose.msrb.mxu1 %v377_v23 }
  0x4a   :  { %1341 = vset.pattern.permute.xlu1 %v1449_v10  ;;  %1342 = vset.pattern.permute.xlu2 %v1449_v10 }
  0x4b   :  { %v554_v24 = vld.sshfl [vmem:[#allocation1] sm:$0xff pattern:$0x73625140]  ;;  %v555_v25 = vld.sshfl [vmem:[#allocation1 + $0x8] sm:$0xff pattern:$0x73625140] }
  0x4c   :  { %v556_v26 = vld.sshfl [vmem:[#allocation1 + $0x10] sm:$0xff pattern:$0x73625140]  ;;  %v557_v27 = vld.sshfl [vmem:[#allocation1 + $0x18] sm:$0xff pattern:$0x73625140] }
  0x4d   :  { %570 = vst [vmem:[#allocation1] ss:$4 sm:$0xff] %v1483_v4 }
  0x4e   :  { %524 = vmatmul.f32.vlgmr.msrb.gmra.mxu2 %v357_v15  ;;  %484 = vmatmul.f32.vlgmr.msrb.gmra.mxu0 %v355_v0  ;;  %v558_v28 = vld.sshfl [vmem:[#allocation1 + $0x20] sm:$0xff pattern:$0x73625140]  ;;  %v559_v29 = vld.sshfl [vmem:[#allocation1 + $0x28] sm:$0xff pattern:$0x73625140] }
  0x4f   :  { %544 = vmatmul.f32.vlgmr.msrb.gmra.mxu3 %v358_v16  ;;  %504 = vmatmul.f32.vlgmr.msrb.gmra.mxu1 %v356_v14  ;;  %v560_v30 = vld.sshfl [vmem:[#allocation1 + $0x30] sm:$0xff pattern:$0x73625140]  ;;  %v561_v31 = vld.sshfl [vmem:[#allocation1 + $0x38] sm:$0xff pattern:$0x73625140] }
  0x50   :  { %572 = vst [vmem:[#allocation1 + $0x20] ss:$4 sm:$0xff] %v1487_v6  ;;  %v1448_v6 = vmov 0.0  }
  0x51   :  { %49 = vst.msk [vmem:[#allocation5] sm:$0x3] %vm48_vm1, %v1448_v6 }
  0x52   :  { %50 = vst.msk [vmem:[#allocation6] sm:$0x3] %vm48_vm1, %v1448_v6 }
  0x53   :  { %45 = vst.msk [vmem:[#allocation2] sm:$0x3] %vm44_vm2, %v1448_v6 }
  0x54   :  { %v575_v32 = vld.sshfl [vmem:[#allocation1 + $0x10] sm:$0xff pattern:$0x73625140]  ;;  %v573_v33 = vld.sshfl [vmem:[#allocation1] sm:$0xff pattern:$0x73625140] }
  0x55   :  { %644 = vmatpush.xpose.msra.mxu2 %v575_v32  ;;  %604 = vmatpush.xpose.msra.mxu0 %v573_v33  ;;  %v576_v34 = vld.sshfl [vmem:[#allocation1 + $0x18] sm:$0xff pattern:$0x73625140]  ;;  %v574_v35 = vld.sshfl [vmem:[#allocation1 + $0x8] sm:$0xff pattern:$0x73625140] }
  0x56   :  { %664 = vmatpush.xpose.msra.mxu3 %v576_v34  ;;  %624 = vmatpush.xpose.msra.mxu1 %v574_v35  ;;  %46 = vst.msk [vmem:[#allocation3] sm:$0x3] %vm44_vm2, %v1448_v6 }
  0x57   :  { %v579_v36 = vld.sshfl [vmem:[#allocation1 + $0x30] sm:$0xff pattern:$0x73625140]  ;;  %v577_v4 = vld.sshfl [vmem:[#allocation1 + $0x20] sm:$0xff pattern:$0x73625140] }
  0x58   :  { %645 = vmatmul.f32.vlgmr.msra.gmra.mxu2 %v556_v26  ;;  %605 = vmatmul.f32.vlgmr.msra.gmra.mxu0 %v554_v24  ;;  %v580_v37 = vld.sshfl [vmem:[#allocation1 + $0x38] sm:$0xff pattern:$0x73625140]  ;;  %v578_v38 = vld.sshfl [vmem:[#allocation1 + $0x28] sm:$0xff pattern:$0x73625140] }
  0x59   :  { %665 = vmatmul.f32.vlgmr.msra.gmra.mxu3 %v557_v27  ;;  %625 = vmatmul.f32.vlgmr.msra.gmra.mxu1 %v555_v25  ;;  %v55_v39 = vld [vmem:[#allocation5] sm:$0x3]  ;;  %47 = vst.msk [vmem:[#allocation4] sm:$0x3] %vm44_vm2, %v1448_v6  ;;  %v100_v42 = vld [vmem:[#allocation6] sm:$0x3] }
  0x5a   :  { %724 = vmatpush.xpose.msrb.mxu2 %v579_v36  ;;  %684 = vmatpush.xpose.msrb.mxu0 %v577_v4  ;;  %v143_v63 = vld [vmem:[#allocation2] sm:$0x3] }
  0x5b   :  { %744 = vmatpush.xpose.msrb.mxu3 %v580_v37  ;;  %704 = vmatpush.xpose.msrb.mxu1 %v578_v38 }
  0x5d   :  { %v347_v21 = vld [vmem:[#allocation3] sm:$0x3] }
  0x60   :  { %725 = vmatmul.f32.vlgmr.msrb.gmra.mxu2 %v560_v30  ;;  %685 = vmatmul.f32.vlgmr.msrb.gmra.mxu0 %v558_v28  ;;  %v550_v6 = vld [vmem:[#allocation4] sm:$0x3] }
  0x61   :  { %745 = vmatmul.f32.vlgmr.msrb.gmra.mxu3 %v561_v31  ;;  %705 = vmatmul.f32.vlgmr.msrb.gmra.mxu1 %v559_v29 }
  0x9b   :  { %v96_v40 = vpop.xlane.xlu0 %95 }
  0x9c   :  { %v97_v41 = vadd.f32 %v96_v40, %v55_v39 }
  0x9e   :  { %99 = vst.msk [vmem:[#allocation5] sm:$0x3] %vm48_vm1, %v97_v41 }
  0xa3   :  { %v140_v43 = vpop.xlane.xlu0 %139 }
  0xa4   :  { %v141_v44 = vadd.f32 %v140_v43, %v100_v42 }
  0xa5   :  { %v1525_v45 = vld [vmem:[#allocation5] sm:$0x3] }
  0xa6   :  { %142 = vst.msk [vmem:[#allocation6] sm:$0x3] %vm48_vm1, %v141_v44  ;;  %v759_v46 = vsel %vm48_vm1, %v1525_v45, 0.0 }
  0xa7   :  { %760 = vadd.xlane.f32.xlu1 %v759_v46 }
  0xad   :  { %v1530_v47 = vld [vmem:[#allocation6] sm:$0x3] }
  0xae   :  { %v769_v49 = vsel %vm48_vm1, %v1530_v47, 0.0 }
  0xaf   :  { %770 = vadd.xlane.f32.xlu1 %v769_v49 }
  0xb1   :  { %v201_v48 = vpop.f32.mrf.mxu0 }
  0xb2   :  { %v221_v50 = vpop.f32.mrf.mxu1 }
  0xb3   :  { %v222_v51 = vadd.f32 %v221_v50, %v201_v48 }
  0xb7   :  { %v241_v52 = vpop.f32.mrf.mxu2 }
  0xb8   :  { %v242_v53 = vadd.f32 %v241_v52, %v222_v51  ;;  %v261_v54 = vpop.f32.mrf.mxu3 }
  0xb9   :  { %v281_v55 = vpop.f32.mrf.mxu0 }
  0xba   :  { %v262_v56 = vadd.f32 %v261_v54, %v242_v53  ;;  %v301_v57 = vpop.f32.mrf.mxu1 }
  0xbc   :  { %v282_v58 = vadd.f32 %v281_v55, %v262_v56 }
  0xbe   :  { %v302_v59 = vadd.f32 %v301_v57, %v282_v58 }
  0xbf   :  { %v321_v60 = vpop.f32.mrf.mxu2 }
  0xc0   :  { %v322_v61 = vadd.f32 %v321_v60, %v302_v59  ;;  %v341_v62 = vpop.f32.mrf.mxu3 }
  0xc2   :  { %v342_v2 = vadd.f32 %v341_v62, %v322_v61 }
  0xc3   :  { %v405_v3 = vpop.f32.mrf.mxu0 }
  0xc4   :  { %v344_v5 = vadd.f32 %v342_v2, %v143_v63  ;;  %v425_v7 = vpop.f32.mrf.mxu1 }
  0xc5   :  { %v426_v8 = vadd.f32 %v425_v7, %v405_v3  ;;  %v1450_v3 = vmov 12.0  }
  0xc6   :  { %346 = vst.msk [vmem:[#allocation2] sm:$0x3] %vm44_vm2, %v344_v5  ;;  %1344 = vrcp.f32 %v1450_v3  ;;  %v1451_v5 = vmov 4.0  }
  0xc7   :  { %1346 = vrcp.f32 %v1451_v5 }
  0xc8   :  { %886 = vperm.xlu1 %1341, %v1525_v45  }
  0xc9   :  { %v445_v9 = vpop.f32.mrf.mxu2 }
  0xca   :  { %v446_v11 = vadd.f32 %v445_v9, %v426_v8  ;;  %v465_v12 = vpop.f32.mrf.mxu3 }
  0xcb   :  { %v485_v13 = vpop.f32.mrf.mxu0 }
  0xcc   :  { %v466_v0 = vadd.f32 %v465_v12, %v446_v11  ;;  %v505_v14 = vpop.f32.mrf.mxu1  ;;  %v1345_v9 = vpop.eup %1344 }
  0xcd   :  { %v1538_v15 = vld [vmem:[#allocation2] sm:$0x3]  ;;  %v1347_v11 = vpop.eup %1346  ;;  %vm821_vm3 = vweird.f32 %v1345_v9 }
  0xce   :  { %v486_v16 = vadd.f32 %v485_v13, %v466_v0  ;;  %v780_v1 = vsel %vm44_vm2, %v1538_v15, 0.0  ;;  %v817_v13 = vmul.f32 12.0, %v1345_v9  ;;  %vm830_vm4 = vweird.f32 %v1347_v11 }
  0xcf   :  { %781 = vadd.xlane.f32.xlu2 %v780_v1 }
  0xd0   :  { %v506_v17 = vadd.f32 %v505_v14, %v486_v16  ;;  %v818_v16 = vsub.f32 1.0, %v817_v13 }
  0xd1   :  { %v525_v18 = vpop.f32.mrf.mxu2 }
  0xd2   :  { %v526_v19 = vadd.f32 %v525_v18, %v506_v17  ;;  %v545_v20 = vpop.f32.mrf.mxu3 }
  0xd4   :  { %v546_v22 = vadd.f32 %v545_v20, %v526_v19  ;;  %v819_v20 = vmul.f32 %v1345_v9, %v818_v16 }
  0xd5   :  { %v606_v23 = vpop.f32.mrf.mxu0 }
  0xd6   :  { %v548_v24 = vadd.f32 %v546_v22, %v347_v21  ;;  %v626_v25 = vpop.f32.mrf.mxu1 }
  0xd7   :  { %v627_v26 = vadd.f32 %v626_v25, %v606_v23  ;;  %v820_v25 = vadd.f32 %v1345_v9, %v819_v20 }
  0xd8   :  { %549 = vst.msk [vmem:[#allocation3] sm:$0x3] %vm44_vm2, %v548_v24 }
  0xdb   :  { %v646_v27 = vpop.f32.mrf.mxu2 }
  0xdc   :  { %v647_v28 = vadd.f32 %v646_v27, %v627_v26  ;;  %v666_v29 = vpop.f32.mrf.mxu3 }
  0xdd   :  { %v686_v30 = vpop.f32.mrf.mxu0 }
  0xde   :  { %v667_v31 = vadd.f32 %v666_v29, %v647_v28  ;;  %v706_v32 = vpop.f32.mrf.mxu1 }
  0xdf   :  { %v1543_v33 = vld [vmem:[#allocation3] sm:$0x3] }
  0xe0   :  { %v687_v34 = vadd.f32 %v686_v30, %v667_v31  ;;  %v801_v35 = vsel %vm44_vm2, %v1543_v33, 0.0  ;;  %v822_v30 = vsel %vm821_vm3, %v1345_v9, %v820_v25 }
  0xe1   :  { %802 = vadd.xlane.f32.xlu0 %v801_v35 }
  0xe2   :  { %v707_v36 = vadd.f32 %v706_v32, %v687_v34 }
  0xe3   :  { %v726_v4 = vpop.f32.mrf.mxu2 }
  0xe4   :  { %v727_v37 = vadd.f32 %v726_v4, %v707_v36  ;;  %v746_v38 = vpop.f32.mrf.mxu3 }
  0xe6   :  { %v747_v39 = vadd.f32 %v746_v38, %v727_v37 }
  0xe8   :  { %v749_v40 = vadd.f32 %v747_v39, %v550_v6 }
  0xea   :  { %750 = vst.msk [vmem:[#allocation4] sm:$0x3] %vm44_vm2, %v749_v40 }
  0xf1   :  { %v1548_v41 = vld [vmem:[#allocation4] sm:$0x3] }
  0xf2   :  { %v790_v42 = vsel %vm44_vm2, %v1548_v41, 0.0 }
  0xf3   :  { %791 = vadd.xlane.f32.xlu2 %v790_v42 }
 0x10a   :  { %852 = vxpose.xlu0.b32.start.end [1/1] (short) (narrow) %v1525_v45, 8 }
 0x10b   :  { %928 = vperm.xlu2 %1342, %v1530_v47  }
 0x11a   :  { %v761_v43 = vpop.xlane.xlu1 %760 }
 0x11b   :  { %v762_v44 = vrot.slane %v761_v43, 4 }
 0x11d   :  { %v763_v46 = vadd.f32 %v762_v44, %v761_v43 }
 0x11f   :  { %v764_v48 = vrot.slane %v763_v46, 2 }
 0x121   :  { %v765_v51 = vadd.f32 %v764_v48, %v763_v46 }
 0x122   :  { %v771_v49 = vpop.xlane.xlu1 %770 }
 0x123   :  { %v772_v50 = vrot.slane %v771_v49, 4  ;;  %v766_v53 = vrot.slane %v765_v51, 1 }
 0x125   :  { %v773_v52 = vadd.f32 %v772_v50, %v771_v49  ;;  %v767_v55 = vadd.f32 %v766_v53, %v765_v51  ;;  %v891_v53 = vmul.f32 2.0, %v1538_v15 }
 0x127   :  { %v774_v54 = vrot.slane %v773_v52, 2  ;;  %1287 = vpush %v767_v55  ;;  %v933_v55 = vmul.f32 2.0, %v1548_v41 }
 0x129   :  { %v775_v56 = vadd.f32 %v774_v54, %v773_v52  ;;  %v937_v54 = vmul.f32 2.0, %v1543_v33 }
 0x12b   :  { %v776_v57 = vrot.slane %v775_v56, 1 }
 0x12d   :  { %v777_v58 = vadd.f32 %v776_v57, %v775_v56 }
 0x12f   :  { %1289 = vpush %v777_v58 }
 0x131   :  { %894 = vxpose.xlu2.b32.start.end [1/1] (short) (narrow) %v1530_v47, 8  ;;  %v826_v47 = vmul.f32 4.0, %v1347_v11 }
 0x133   :  { %v827_v17 = vsub.f32 1.0, %v826_v47 }
 0x135   :  { %v828_v22 = vmul.f32 %v1347_v11, %v827_v17 }
 0x137   :  { %v829_v27 = vadd.f32 %v1347_v11, %v828_v22 }
 0x139   :  { %v831_v31 = vsel %vm830_vm4, %v1347_v11, %v829_v27 }
 0x13a   :  { %v887_v49 = vpop.permute.xlu1 %886 }
 0x142   :  { %v782_v45 = vpop.xlane.xlu2 %781 }
 0x143   :  { %v783_v59 = vrot.slane %v782_v45, 4 }
 0x145   :  { %v784_v60 = vadd.f32 %v783_v59, %v782_v45 }
 0x147   :  { %v785_v61 = vrot.slane %v784_v60, 2 }
 0x149   :  { %v786_v62 = vadd.f32 %v785_v61, %v784_v60 }
 0x14b   :  { %v787_v63 = vrot.slane %v786_v62, 1 }
 0x14d   :  { %v788_v2 = vadd.f32 %v787_v63, %v786_v62 }
 0x14f   :  { %1291 = vpush %v788_v2 }
 0x154   :  { %v803_v7 = vpop.xlane.xlu0 %802 }
 0x155   :  { %v804_v8 = vrot.slane %v803_v7, 4 }
 0x157   :  { %v805_v12 = vadd.f32 %v804_v8, %v803_v7 }
 0x158   :  { %s1288_s0 = spop %1287 }
 0x159   :  { %v806_v0 = vrot.slane %v805_v12, 2 }
 0x15b   :  { %v807_v19 = vadd.f32 %v806_v0, %v805_v12 }
 0x15d   :  { %v808_v24 = vrot.slane %v807_v19, 1 }
 0x15f   :  { %v809_v29 = vadd.f32 %v808_v24, %v807_v19 }
 0x160   :  { %s1290_s1 = spop %1289 }
 0x161   :  { %s779_s20 = sadd.f32 %s1290_s1, %s1288_s0 }
 0x163   :  { %s813_s26 = smul.f32 8.0, %s779_s20 }
 0x166   :  { %v792_v14 = vpop.xlane.xlu2 %791 }
 0x167   :  { %v793_v1 = vrot.slane %v792_v14, 4 }
 0x169   :  { %v794_v18 = vadd.f32 %v793_v1, %v792_v14 }
 0x16b   :  { %v795_v21 = vrot.slane %v794_v18, 2 }
 0x16d   :  { %v796_v23 = vadd.f32 %v795_v21, %v794_v18 }
 0x16e   :  { %v929_v42 = vpop.permute.xlu2 %928 }
 0x16f   :  { %v797_v26 = vrot.slane %v796_v23, 1 }
 0x171   :  { %v798_v28 = vadd.f32 %v797_v26, %v796_v23  ;;  %1343 = vset.pattern.permute.xlu0 %v1449_v10 }
 0x173   :  { %1293 = vpush %v798_v28 }
 0x174   :  { %1295 = vpush %v809_v29 }
 0x175   :  { %1297 = vpush %v822_v30 }
 0x176   :  { %1299 = vpush %v831_v31 }
 0x180   :  { %s1292_s19 = spop %1291 }
 0x1a4   :  { %s1294_s21 = spop %1293 }
 0x1a5   :  { %s800_s22 = sadd.f32 %s1294_s21, %s1292_s19  ;;  %s1296_s23 = spop %1295 }
 0x1a6   :  { %s811_s24 = smul.f32 2.0, %s1296_s23  ;;  %s1298_s28 = spop %1297 }
 0x1a7   :  { %s1556_s30 = spop %1299 }
 0x1a8   :  { %s812_s25 = sadd.f32 %s811_s24, %s800_s22 }
 0x1aa   :  { %s814_s27 = smul.f32 2.0, %s812_s25 }
 0x1ac   :  { %s815_s29 = ssub.f32 %s813_s26, %s814_s27 }
 0x1ae   :  { %s824_s3 = smul.f32 %s1298_s28, %s815_s29  ;;  %v868_v43 = vpop.trf.xlu0 }
 0x1af   :  { %v889_v46 = vperm.slane %v868_v43, 0 }
 0x1b0   :  { %s833_s4 = smul.f32 %s1556_s30, %s824_s3 }
 0x1b1   :  { %v890_v50 = vadd.f32 %v889_v46, %v887_v49 }
 0x1b2   :  { %s834_s6 = smax.f32 %s1452_s5, %s833_s4 }
 0x1b3   :  { %v835_v10 = vstv %s834_s6  ;;  %v892_v56 = vsub.f32 %v890_v50, %v891_v53 }
 0x1b4   :  { %1348 = vrcp.f32 %v835_v10  ;;  %v847_v36 = vand.u32 2147483648, %v835_v10  ;;  %v845_v37 = vand.u32 2147483647, %v835_v10  ;;  %vm841_vm6 = vweird.f32 %v835_v10 }
 0x1b5   :  { %v893_v45 = vmax.f32 %v892_v56, 0.0 }
 0x1b6   :  { %v848_v6 = vor.u32 1.1754944e-38, %v847_v36  ;;  %vm846_vm8 = vcmp.eq.f32.partialorder %v845_v37, 8.507059e+37 }
 0x1ba   :  { %v1349_v32 = vpop.eup %1348 }
 0x1bb   :  { %v837_v34 = vmul.f32 %v1349_v32, %v835_v10  ;;  %vm842_vm5 = vweird.f32 %v1349_v32 }
 0x1bc   :  { %vm843_vm7 = vmor %vm841_vm6, %vm842_vm5 }
 0x1bd   :  { %v838_v35 = vsub.f32 1.0, %v837_v34 }
 0x1bf   :  { %v839_v4 = vmul.f32 %v1349_v32, %v838_v35 }
 0x1c1   :  { %v840_v38 = vadd.f32 %v1349_v32, %v839_v4 }
 0x1c3   :  { %v844_v39 = vsel %vm843_vm7, %v1349_v32, %v840_v38 }
 0x1c4   :  { %v849_v40 = vsel %vm846_vm8, %v848_v6, %v844_v39 }
 0x1c5   :  { %1301 = vpush %v849_v40 }
 0x1ca   :  { %v910_v44 = vpop.trf.xlu2 }
 0x1cb   :  { %v931_v48 = vperm.slane %v910_v44, 0 }
 0x1cd   :  { %v932_v51 = vadd.f32 %v931_v48, %v929_v42  ;;  %v936_v52 = vadd.f32 %v931_v48, %v887_v49 }
 0x1cf   :  { %v934_v57 = vsub.f32 %v932_v51, %v933_v55  ;;  %v938_v58 = vsub.f32 %v936_v52, %v937_v54 }
 0x1d1   :  { %v935_v59 = vmax.f32 %v934_v57, 0.0  ;;  %v939_v60 = vmax.f32 %v938_v58, 0.0 }
 0x1f6   :  { %s1302_s7 = spop %1301 }
 0x1f7   :  { %s851_s8 = smul.f32 -1.0, %s1302_s7 }
 0x1f9   :  { %v940_v61 = vstv %s851_s8 }
 0x1fa   :  { %v941_v62 = vmul.f32 %v940_v61, %v893_v45  ;;  %v1046_v63 = vmul.f32 %v940_v61, %v935_v59  ;;  %v1151_v2 = vmul.f32 %v940_v61, %v939_v60 }
 0x1fc   :  { %v942_v3 = vmul.f32 1.442695, %v941_v62  ;;  %v1047_v5 = vmul.f32 1.442695, %v1046_v63  ;;  %v1152_v7 = vmul.f32 1.442695, %v1151_v2 }
 0x1fe   :  { %1350 = vpow2.f32 %v942_v3 }
 0x1ff   :  { %1352 = vpow2.f32 %v1047_v5 }
 0x200   :  { %1354 = vpow2.f32 %v1152_v7 }
 0x204   :  { %v1351_v15 = vpop.eup %1350 }
 0x205   :  { %v1353_v33 = vpop.eup %1352  ;;  %v944_v41 = vsel %vm44_vm2, %v1351_v15, 0.0  ;;  %1356 = vrsqrt.f32 %v1351_v15  ;;  %vm961_vm9 = vcmp.eq.f32.partialorder %v1351_v15, inf  ;;  %vm963_vm10 = vcmp.eq.f32.partialorder %v1351_v15, 0.0 }
 0x206   :  { %v1355_v8 = vpop.eup %1354  ;;  %945 = vadd.xlane.f32.xlu1 %v944_v41  ;;  %1358 = vrsqrt.f32 %v1353_v33  ;;  %v1049_v47 = vsel %vm44_vm2, %v1353_v33, 0.0  ;;  %v964_v28 = vand.u32 2147483648, %v1351_v15  ;;  %vm1066_vm11 = vcmp.eq.f32.partialorder %v1353_v33, inf }
 0x207   :  { %1360 = vrsqrt.f32 %v1355_v8  ;;  %vm1068_vm12 = vcmp.eq.f32.partialorder %v1353_v33, 0.0  ;;  %v1069_v31 = vand.u32 2147483648, %v1353_v33  ;;  %vm1171_vm13 = vcmp.eq.f32.partialorder %v1355_v8, inf }
 0x208   :  { %vm1173_vm14 = vcmp.eq.f32.partialorder %v1355_v8, 0.0  ;;  %v1174_v35 = vand.u32 2147483648, %v1355_v8  ;;  %v1154_v46 = vsel %vm44_vm2, %v1355_v8, 0.0 }
 0x20b   :  { %v1357_v9 = vpop.eup %1356 }
 0x20c   :  { %v1359_v11 = vpop.eup %1358  ;;  %v955_v12 = vmul.f32 %v1357_v9, %v1351_v15 }
 0x20d   :  { %v1361_v13 = vpop.eup %1360  ;;  %v1060_v0 = vmul.f32 %v1359_v11, %v1353_v33 }
 0x20e   :  { %1050 = vadd.xlane.f32.xlu1 %v1049_v47  ;;  %v956_v14 = vmul.f32 %v1357_v9, %v955_v12  ;;  %v1165_v16 = vmul.f32 %v1361_v13, %v1355_v8 }
 0x20f   :  { %v1061_v1 = vmul.f32 %v1359_v11, %v1060_v0 }
 0x210   :  { %v957_v17 = vmul.f32 0.5, %v956_v14  ;;  %v1166_v18 = vmul.f32 %v1361_v13, %v1165_v16 }
 0x211   :  { %v1062_v19 = vmul.f32 0.5, %v1061_v1 }
 0x212   :  { %v958_v20 = vsub.f32 1.5, %v957_v17  ;;  %v1167_v21 = vmul.f32 0.5, %v1166_v18 }
 0x213   :  { %v1063_v22 = vsub.f32 1.5, %v1062_v19 }
 0x214   :  { %v959_v23 = vmul.f32 %v1357_v9, %v958_v20  ;;  %v1168_v24 = vsub.f32 1.5, %v1167_v21 }
 0x215   :  { %v1064_v25 = vmul.f32 %v1359_v11, %v1063_v22 }
 0x216   :  { %v960_v26 = vmul.f32 %v1351_v15, %v959_v23  ;;  %v1169_v27 = vmul.f32 %v1361_v13, %v1168_v24 }
 0x217   :  { %v1065_v29 = vmul.f32 %v1353_v33, %v1064_v25 }
 0x218   :  { %v962_v30 = vsel %vm961_vm9, %v1351_v15, %v960_v26  ;;  %v1170_v10 = vmul.f32 %v1355_v8, %v1169_v27 }
 0x219   :  { %v965_v32 = vsel %vm963_vm10, %v964_v28, %v962_v30  ;;  %v1067_v34 = vsel %vm1066_vm11, %v1353_v33, %v1065_v29 }
 0x21a   :  { %v966_v36 = vsel %vm44_vm2, %v965_v32, 0.0  ;;  %1362 = vrsqrt.f32 %v965_v32  ;;  %v1070_v4 = vsel %vm1068_vm12, %v1069_v31, %v1067_v34  ;;  %v1172_v37 = vsel %vm1171_vm13, %v1355_v8, %v1170_v10 }
 0x21b   :  { %967 = vadd.xlane.f32.xlu0 %v966_v36  ;;  %v1071_v38 = vsel %vm44_vm2, %v1070_v4, 0.0  ;;  %1364 = vrsqrt.f32 %v1070_v4  ;;  %v1175_v6 = vsel %vm1173_vm14, %v1174_v35, %v1172_v37  ;;  %vm984_vm15 = vcmp.eq.f32.partialorder %v965_v32, inf }
 0x21c   :  { %1072 = vadd.xlane.f32.xlu1 %v1071_v38  ;;  %1366 = vrsqrt.f32 %v1175_v6  ;;  %v1176_v59 = vsel %vm44_vm2, %v1175_v6, 0.0  ;;  %vm986_vm0 = vcmp.eq.f32.partialorder %v965_v32, 0.0  ;;  %v987_v62 = vand.u32 2147483648, %v965_v32 }
 0x21d   :  { %vm1089_vm1 = vcmp.eq.f32.partialorder %v1070_v4, inf  ;;  %vm1091_vm3 = vcmp.eq.f32.partialorder %v1070_v4, 0.0  ;;  %v1092_v3 = vand.u32 2147483648, %v1070_v4  ;;  %vm1194_vm4 = vcmp.eq.f32.partialorder %v1175_v6, inf }
 0x21e   :  { %vm1196_vm5 = vcmp.eq.f32.partialorder %v1175_v6, 0.0  ;;  %v1197_v33 = vand.u32 2147483648, %v1175_v6 }
 0x220   :  { %v1363_v39 = vpop.eup %1362 }
 0x221   :  { %v1365_v40 = vpop.eup %1364  ;;  %v978_v42 = vmul.f32 %v1363_v39, %v965_v32 }
 0x222   :  { %v1367_v43 = vpop.eup %1366  ;;  %v1083_v44 = vmul.f32 %v1365_v40, %v1070_v4 }
 0x223   :  { %v979_v48 = vmul.f32 %v1363_v39, %v978_v42  ;;  %v1188_v49 = vmul.f32 %v1367_v43, %v1175_v6 }
 0x224   :  { %1155 = vadd.xlane.f32.xlu1 %v1154_v46  ;;  %v1084_v50 = vmul.f32 %v1365_v40, %v1083_v44 }
 0x225   :  { %v980_v51 = vmul.f32 0.5, %v979_v48  ;;  %v1189_v52 = vmul.f32 %v1367_v43, %v1188_v49 }
 0x226   :  { %v1085_v53 = vmul.f32 0.5, %v1084_v50 }
 0x227   :  { %v981_v54 = vsub.f32 1.5, %v980_v51  ;;  %v1190_v55 = vmul.f32 0.5, %v1189_v52 }
 0x228   :  { %v1086_v56 = vsub.f32 1.5, %v1085_v53 }
 0x229   :  { %v982_v57 = vmul.f32 %v1363_v39, %v981_v54  ;;  %v1191_v58 = vsub.f32 1.5, %v1190_v55 }
 0x22a   :  { %v1087_v45 = vmul.f32 %v1365_v40, %v1086_v56 }
 0x22b   :  { %v983_v60 = vmul.f32 %v982_v57, %v965_v32  ;;  %v1192_v61 = vmul.f32 %v1367_v43, %v1191_v58 }
 0x22c   :  { %1177 = vadd.xlane.f32.xlu1 %v1176_v59  ;;  %v1088_v63 = vmul.f32 %v1087_v45, %v1070_v4 }
 0x22d   :  { %v985_v2 = vsel %vm984_vm15, %v965_v32, %v983_v60  ;;  %v1193_v5 = vmul.f32 %v1192_v61, %v1175_v6 }
 0x22e   :  { %v988_v7 = vsel %vm986_vm0, %v987_v62, %v985_v2  ;;  %v1090_v15 = vsel %vm1089_vm1, %v1070_v4, %v1088_v63 }
 0x22f   :  { %v989_v41 = vsel %vm44_vm2, %v988_v7, 0.0  ;;  %1368 = vrsqrt.f32 %v988_v7  ;;  %v1093_v8 = vsel %vm1091_vm3, %v1092_v3, %v1090_v15  ;;  %v1195_v9 = vsel %vm1194_vm4, %v1175_v6, %v1193_v5 }
 0x230   :  { %990 = vadd.xlane.f32.xlu2 %v989_v41  ;;  %1370 = vrsqrt.f32 %v1093_v8  ;;  %v1198_v11 = vsel %vm1196_vm5, %v1197_v33, %v1195_v9  ;;  %v1094_v12 = vsel %vm44_vm2, %v1093_v8, 0.0  ;;  %vm1007_vm6 = vcmp.eq.f32.partialorder %v988_v7, inf }
 0x231   :  { %1372 = vrsqrt.f32 %v1198_v11  ;;  %v1199_v21 = vsel %vm44_vm2, %v1198_v11, 0.0  ;;  %vm1009_vm7 = vcmp.eq.f32.partialorder %v988_v7, 0.0  ;;  %v1010_v31 = vand.u32 2147483648, %v988_v7 }
 0x232   :  { %vm1112_vm8 = vcmp.eq.f32.partialorder %v1093_v8, inf  ;;  %vm1114_vm9 = vcmp.eq.f32.partialorder %v1093_v8, 0.0  ;;  %v1115_v34 = vand.u32 2147483648, %v1093_v8  ;;  %vm1217_vm10 = vcmp.eq.f32.partialorder %v1198_v11, inf }
 0x233   :  { %vm1219_vm11 = vcmp.eq.f32.partialorder %v1198_v11, 0.0  ;;  %v1220_v37 = vand.u32 2147483648, %v1198_v11 }
 0x234   :  { %1095 = vadd.xlane.f32.xlu1 %v1094_v12 }
 0x235   :  { %v1369_v13 = vpop.eup %1368 }
 0x236   :  { %v1371_v47 = vpop.eup %1370  ;;  %v1001_v0 = vmul.f32 %v1369_v13, %v988_v7 }
 0x237   :  { %v1373_v14 = vpop.eup %1372  ;;  %v1106_v16 = vmul.f32 %v1371_v47, %v1093_v8 }
 0x238   :  { %v1002_v1 = vmul.f32 %v1369_v13, %v1001_v0  ;;  %v1211_v17 = vmul.f32 %v1373_v14, %v1198_v11 }
 0x239   :  { %v1107_v18 = vmul.f32 %v1371_v47, %v1106_v16 }
 0x23a   :  { %v1003_v19 = vmul.f32 0.5, %v1002_v1  ;;  %v1212_v20 = vmul.f32 %v1373_v14, %v1211_v17 }
 0x23b   :  { %v1108_v22 = vmul.f32 0.5, %v1107_v18 }
 0x23c   :  { %1200 = vadd.xlane.f32.xlu1 %v1199_v21  ;;  %v1004_v23 = vsub.f32 1.5, %v1003_v19  ;;  %v1213_v24 = vmul.f32 0.5, %v1212_v20 }
 0x23d   :  { %v1109_v25 = vsub.f32 1.5, %v1108_v22 }
 0x23e   :  { %v1005_v26 = vmul.f32 %v1369_v13, %v1004_v23  ;;  %v1214_v27 = vsub.f32 1.5, %v1213_v24 }
 0x23f   :  { %v1110_v28 = vmul.f32 %v1371_v47, %v1109_v25 }
 0x240   :  { %v1006_v29 = vmul.f32 %v1005_v26, %v988_v7  ;;  %v1215_v30 = vmul.f32 %v1373_v14, %v1214_v27 }
 0x241   :  { %v1111_v10 = vmul.f32 %v1110_v28, %v1093_v8 }
 0x242   :  { %v1008_v32 = vsel %vm1007_vm6, %v988_v7, %v1006_v29  ;;  %v1216_v35 = vmul.f32 %v1215_v30, %v1198_v11 }
 0x243   :  { %v1011_v36 = vsel %vm1009_vm7, %v1010_v31, %v1008_v32  ;;  %v1113_v4 = vsel %vm1112_vm8, %v1093_v8, %v1111_v10 }
 0x244   :  { %v1012_v38 = vsel %vm44_vm2, %v1011_v36, 0.0  ;;  %v1116_v6 = vsel %vm1114_vm9, %v1115_v34, %v1113_v4  ;;  %v1218_v39 = vsel %vm1217_vm10, %v1198_v11, %v1216_v35  ;;  %1374 = vrsqrt.f32 %v1011_v36 }
 0x245   :  { %1013 = vadd.xlane.f32.xlu1 %v1012_v38  ;;  %v1221_v40 = vsel %vm1219_vm11, %v1220_v37, %v1218_v39  ;;  %1376 = vrsqrt.f32 %v1116_v6  ;;  %v1117_v46 = vsel %vm44_vm2, %v1116_v6, 0.0  ;;  %vm1030_vm12 = vcmp.eq.f32.partialorder %v1011_v36, inf }
 0x246   :  { %1378 = vrsqrt.f32 %v1221_v40  ;;  %v1222_v45 = vsel %vm44_vm2, %v1221_v40, 0.0  ;;  %v1033_v63 = vand.u32 2147483648, %v1011_v36  ;;  %vm1032_vm13 = vcmp.eq.f32.partialorder %v1011_v36, 0.0 }
 0x247   :  { %vm1135_vm14 = vcmp.eq.f32.partialorder %v1116_v6, inf  ;;  %v1138_v41 = vand.u32 2147483648, %v1116_v6  ;;  %vm1137_vm15 = vcmp.eq.f32.partialorder %v1116_v6, 0.0  ;;  %vm1240_vm0 = vcmp.eq.f32.partialorder %v1221_v40, inf }
 0x248   :  { %v1243_v13 = vand.u32 2147483648, %v1221_v40  ;;  %vm1242_vm1 = vcmp.eq.f32.partialorder %v1221_v40, 0.0 }
 0x24a   :  { %v1375_v42 = vpop.eup %1374 }
 0x24b   :  { %v1024_v43 = vmul.f32 %v1375_v42, %v1011_v36  ;;  %v1377_v44 = vpop.eup %1376 }
 0x24c   :  { %v1379_v48 = vpop.eup %1378  ;;  %v1129_v50 = vmul.f32 %v1377_v44, %v1116_v6 }
 0x24d   :  { %1118 = vadd.xlane.f32.xlu1 %v1117_v46  ;;  %v1025_v49 = vmul.f32 %v1375_v42, %v1024_v43  ;;  %v1234_v51 = vmul.f32 %v1379_v48, %v1221_v40 }
 0x24e   :  { %v1130_v53 = vmul.f32 %v1377_v44, %v1129_v50 }
 0x24f   :  { %v1026_v52 = vmul.f32 0.5, %v1025_v49  ;;  %v1235_v56 = vmul.f32 %v1379_v48, %v1234_v51 }
 0x250   :  { %v1131_v55 = vmul.f32 0.5, %v1130_v53 }
 0x251   :  { %v1027_v54 = vsub.f32 1.5, %v1026_v52  ;;  %v1236_v61 = vmul.f32 0.5, %v1235_v56 }
 0x252   :  { %v1132_v58 = vsub.f32 1.5, %v1131_v55 }
 0x253   :  { %v1028_v57 = vmul.f32 %v1375_v42, %v1027_v54  ;;  %v1237_v5 = vsub.f32 1.5, %v1236_v61 }
 0x254   :  { %v1133_v60 = vmul.f32 %v1377_v44, %v1132_v58 }
 0x255   :  { %1223 = vadd.xlane.f32.xlu1 %v1222_v45  ;;  %v1029_v59 = vmul.f32 %v1028_v57, %v1011_v36  ;;  %v1238_v33 = vmul.f32 %v1379_v48, %v1237_v5 }
 0x256   :  { %v1134_v3 = vmul.f32 %v1133_v60, %v1116_v6 }
 0x257   :  { %v1031_v62 = vsel %vm1030_vm12, %v1011_v36, %v1029_v59  ;;  %v1239_v9 = vmul.f32 %v1238_v33, %v1221_v40 }
 0x258   :  { %v1034_v2 = vsel %vm1032_vm13, %v1033_v63, %v1031_v62  ;;  %v1136_v15 = vsel %vm1135_vm14, %v1116_v6, %v1134_v3 }
 0x259   :  { %v1035_v7 = vsel %vm44_vm2, %v1034_v2, 0.0  ;;  %v1139_v8 = vsel %vm1137_vm15, %v1138_v41, %v1136_v15  ;;  %v1241_v12 = vsel %vm1240_vm0, %v1221_v40, %v1239_v9 }
 0x25a   :  { %v1140_v11 = vsel %vm44_vm2, %v1139_v8, 0.0  ;;  %v1244_v47 = vsel %vm1242_vm1, %v1243_v13, %v1241_v12 }
 0x25b   :  { %v1245_v0 = vsel %vm44_vm2, %v1244_v47, 0.0 }
 0x25d   :  { %1036 = vadd.xlane.f32.xlu1 %v1035_v7 }
 0x265   :  { %1141 = vadd.xlane.f32.xlu1 %v1140_v11 }
 0x26d   :  { %1246 = vadd.xlane.f32.xlu1 %v1245_v0 }
 0x279   :  { %v946_v14 = vpop.xlane.xlu1 %945 }
 0x27a   :  { %v947_v16 = vrot.slane %v946_v14, 4 }
 0x27c   :  { %v948_v1 = vadd.f32 %v947_v16, %v946_v14 }
 0x27e   :  { %v949_v17 = vrot.slane %v948_v1, 2 }
 0x280   :  { %v950_v18 = vadd.f32 %v949_v17, %v948_v1 }
 0x281   :  { %v1051_v21 = vpop.xlane.xlu1 %1050 }
 0x282   :  { %v951_v19 = vrot.slane %v950_v18, 1  ;;  %v1052_v50 = vrot.slane %v1051_v21, 4 }
 0x284   :  { %v952_v20 = vadd.f32 %v951_v19, %v950_v18  ;;  %v1053_v55 = vadd.f32 %v1052_v50, %v1051_v21 }
 0x286   :  { %1303 = vpush %v952_v20  ;;  %v1054_v45 = vrot.slane %v1053_v55, 2 }
 0x288   :  { %v1055_v41 = vadd.f32 %v1054_v45, %v1053_v55 }
 0x28a   :  { %v1056_v17 = vrot.slane %v1055_v41, 1 }
 0x28e   :  { %v968_v22 = vpop.xlane.xlu0 %967 }
 0x28f   :  { %v969_v23 = vrot.slane %v968_v22, 4  ;;  %v1073_v24 = vpop.xlane.xlu1 %1072 }
 0x290   :  { %v1074_v52 = vrot.slane %v1073_v24, 4 }
 0x291   :  { %v970_v25 = vadd.f32 %v969_v23, %v968_v22 }
 0x292   :  { %v1075_v56 = vadd.f32 %v1074_v52, %v1073_v24 }
 0x293   :  { %v971_v26 = vrot.slane %v970_v25, 2 }
 0x294   :  { %v1076_v61 = vrot.slane %v1075_v56, 2 }
 0x295   :  { %v972_v27 = vadd.f32 %v971_v26, %v970_v25 }
 0x296   :  { %v1077_v11 = vadd.f32 %v1076_v61, %v1075_v56 }
 0x297   :  { %v1156_v28 = vpop.xlane.xlu1 %1155  ;;  %v973_v29 = vrot.slane %v972_v27, 1 }
 0x298   :  { %v1157_v59 = vrot.slane %v1156_v28, 4  ;;  %v1078_v21 = vrot.slane %v1077_v11, 1 }
 0x299   :  { %v974_v30 = vadd.f32 %v973_v29, %v972_v27 }
 0x29a   :  { %v1158_v33 = vadd.f32 %v1157_v59, %v1156_v28  ;;  %v1057_v28 = vadd.f32 %v1056_v17, %v1055_v41 }
 0x29b   :  { %1305 = vpush %v974_v30 }
 0x29c   :  { %v1159_v16 = vrot.slane %v1158_v33, 2 }
 0x29e   :  { %v1160_v29 = vadd.f32 %v1159_v16, %v1158_v33 }
 0x29f   :  { %v1178_v31 = vpop.xlane.xlu1 %1177 }
 0x2a0   :  { %v1179_v62 = vrot.slane %v1178_v31, 4 }
 0x2a2   :  { %v1180_v8 = vadd.f32 %v1179_v62, %v1178_v31  ;;  %v1079_v31 = vadd.f32 %v1078_v21, %v1077_v11 }
 0x2a3   :  { %v991_v10 = vpop.xlane.xlu2 %990 }
 0x2a4   :  { %v992_v32 = vrot.slane %v991_v10, 4  ;;  %v1181_v18 = vrot.slane %v1180_v8, 2 }
 0x2a6   :  { %v993_v34 = vadd.f32 %v992_v32, %v991_v10  ;;  %v1182_v10 = vadd.f32 %v1181_v18, %v1180_v8 }
 0x2a7   :  { %v1096_v35 = vpop.xlane.xlu1 %1095 }
 0x2a8   :  { %v994_v36 = vrot.slane %v993_v34, 2  ;;  %v1097_v53 = vrot.slane %v1096_v35, 4 }
 0x2aa   :  { %v995_v4 = vadd.f32 %v994_v36, %v993_v34  ;;  %v1098_v57 = vadd.f32 %v1097_v53, %v1096_v35 }
 0x2ac   :  { %v996_v37 = vrot.slane %v995_v4, 1  ;;  %v1099_v2 = vrot.slane %v1098_v57, 2 }
 0x2ae   :  { %v997_v38 = vadd.f32 %v996_v37, %v995_v4  ;;  %v1100_v13 = vadd.f32 %v1099_v2, %v1098_v57 }
 0x2af   :  { %v1201_v6 = vpop.xlane.xlu1 %1200 }
 0x2b0   :  { %1307 = vpush %v997_v38  ;;  %v1202_v3 = vrot.slane %v1201_v6, 4  ;;  %v1101_v23 = vrot.slane %v1100_v13, 1  ;;  %v1161_v38 = vrot.slane %v1160_v29, 1 }
 0x2b2   :  { %v1203_v12 = vadd.f32 %v1202_v3, %v1201_v6  ;;  %v1102_v32 = vadd.f32 %v1101_v23, %v1100_v13 }
 0x2b4   :  { %v1204_v22 = vrot.slane %v1203_v12, 2 }
 0x2b6   :  { %v1205_v34 = vadd.f32 %v1204_v22, %v1203_v12 }
 0x2b7   :  { %s1304_s9 = spop %1303 }
 0x2b8   :  { %v1014_v39 = vpop.xlane.xlu1 %1013 }
 0x2b9   :  { %v1015_v40 = vrot.slane %v1014_v39, 4 }
 0x2bb   :  { %v1016_v42 = vadd.f32 %v1015_v40, %v1014_v39  ;;  %v1183_v40 = vrot.slane %v1182_v10, 1 }
 0x2bd   :  { %v1017_v43 = vrot.slane %v1016_v42, 2  ;;  %v1184_v50 = vadd.f32 %v1183_v40, %v1182_v10 }
 0x2bf   :  { %v1018_v44 = vadd.f32 %v1017_v43, %v1016_v42  ;;  %v1206_v42 = vrot.slane %v1205_v34, 1 }
 0x2c0   :  { %v1119_v46 = vpop.xlane.xlu1 %1118 }
 0x2c1   :  { %v1019_v48 = vrot.slane %v1018_v44, 1  ;;  %v1120_v54 = vrot.slane %v1119_v46, 4 }
 0x2c3   :  { %v1020_v49 = vadd.f32 %v1019_v48, %v1018_v44  ;;  %v1121_v58 = vadd.f32 %v1120_v54, %v1119_v46  ;;  %v1162_v48 = vadd.f32 %v1161_v38, %v1160_v29 }
 0x2c5   :  { %1309 = vpush %v1020_v49  ;;  %v1122_v5 = vrot.slane %v1121_v58, 2 }
 0x2c7   :  { %v1123_v14 = vadd.f32 %v1122_v5, %v1121_v58 }
 0x2c8   :  { %v1224_v51 = vpop.xlane.xlu1 %1223 }
 0x2c9   :  { %v1225_v7 = vrot.slane %v1224_v51, 4  ;;  %v1124_v27 = vrot.slane %v1123_v14, 1 }
 0x2cb   :  { %v1226_v47 = vadd.f32 %v1225_v7, %v1224_v51  ;;  %v1125_v35 = vadd.f32 %v1124_v27, %v1123_v14  ;;  %v1207_v51 = vadd.f32 %v1206_v42, %v1205_v34 }
 0x2cc   :  { %s1306_s10 = spop %1305 }
 0x2cd   :  { %v1227_v24 = vrot.slane %v1226_v47, 2  ;;  %s976_s18 = sadd.f32 %s1306_s10, %s1304_s9 }
 0x2cf   :  { %v1228_v4 = vadd.f32 %v1227_v24, %v1226_v47 }
 0x2d0   :  { %v1037_v60 = vpop.xlane.xlu1 %1036 }
 0x2d1   :  { %v1038_v63 = vrot.slane %v1037_v60, 4  ;;  %v1229_v46 = vrot.slane %v1228_v4, 1 }
 0x2d3   :  { %v1039_v15 = vadd.f32 %v1038_v63, %v1037_v60  ;;  %v1230_v53 = vadd.f32 %v1229_v46, %v1228_v4 }
 0x2d5   :  { %v1040_v9 = vrot.slane %v1039_v15, 2 }
 0x2d7   :  { %v1041_v0 = vadd.f32 %v1040_v9, %v1039_v15 }
 0x2d8   :  { %v1142_v1 = vpop.xlane.xlu1 %1141 }
 0x2d9   :  { %v1143_v19 = vrot.slane %v1142_v1, 4  ;;  %v1042_v20 = vrot.slane %v1041_v0, 1 }
 0x2db   :  { %v1144_v25 = vadd.f32 %v1143_v19, %v1142_v1  ;;  %v1043_v26 = vadd.f32 %v1042_v20, %v1041_v0 }
 0x2dd   :  { %v1145_v30 = vrot.slane %v1144_v25, 2  ;;  %1311 = vpush %v1043_v26 }
 0x2de   :  { %1313 = vpush %v1057_v28 }
 0x2df   :  { %1315 = vpush %v1079_v31  ;;  %v1146_v36 = vadd.f32 %v1145_v30, %v1144_v25 }
 0x2e0   :  { %1317 = vpush %v1102_v32  ;;  %v1247_v37 = vpop.xlane.xlu1 %1246 }
 0x2e1   :  { %1319 = vpush %v1125_v35  ;;  %v1248_v6 = vrot.slane %v1247_v37, 4  ;;  %v1147_v39 = vrot.slane %v1146_v36, 1  ;;  %s1308_s11 = spop %1307 }
 0x2e2   :  { %s999_s1 = sadd.f32 %s1308_s11, %s976_s18  ;;  %s1275_s11 = sshll.u32 %s1583_s2, 4  ;;  %s1276_s11 = int_to_ptr.hbm [resolvable:$true] %s1275_s11 }
 0x2e3   :  { %v1249_v43 = vadd.f32 %v1248_v6, %v1247_v37  ;;  %v1148_v44 = vadd.f32 %v1147_v39, %v1146_v36 }
 0x2e5   :  { %v1250_v49 = vrot.slane %v1249_v43, 2  ;;  %1321 = vpush %v1148_v44 }
 0x2e6   :  { %1323 = vpush %v1162_v48 }
 0x2e7   :  { %v1251_v52 = vadd.f32 %v1250_v49, %v1249_v43  ;;  %1325 = vpush %v1184_v50 }
 0x2e8   :  { %1327 = vpush %v1207_v51 }
 0x2e9   :  { %1329 = vpush %v1230_v53  ;;  %v1252_v54 = vrot.slane %v1251_v52, 1 }
 0x2eb   :  { %v1253_v55 = vadd.f32 %v1252_v54, %v1251_v52 }
 0x2ed   :  { %1331 = vpush %v1253_v55 }
 0x2f6   :  { %s1310_s12 = spop %1309 }
 0x2f7   :  { %s1022_s23 = sadd.f32 %s1310_s12, %s999_s1  ;;  %s1453_s12 = smov [#allocation12]  }
 0x30e   :  { %s1312_s13 = spop %1311 }
 0x30f   :  { %s1314_s14 = spop %1313  ;;  %s1045_s5 = sadd.f32 %s1312_s13, %s1022_s23 }
 0x310   :  { %s1316_s15 = spop %1315 }
 0x311   :  { %s1081_s16 = sadd.f32 %s1316_s15, %s1314_s14  ;;  %s1318_s17 = spop %1317 }
 0x312   :  { %s1320_s0 = spop %1319 }
 0x313   :  { %s1104_s20 = sadd.f32 %s1318_s17, %s1081_s16 }
 0x315   :  { %s1127_s25 = sadd.f32 %s1320_s0, %s1104_s20 }
 0x316   :  { %s1322_s19 = spop %1321 }
 0x317   :  { %s1324_s21 = spop %1323  ;;  %s1150_s28 = sadd.f32 %s1322_s19, %s1127_s25 }
 0x318   :  { %s1326_s22 = spop %1325 }
 0x319   :  { %s1186_s24 = sadd.f32 %s1326_s22, %s1324_s21  ;;  %s1328_s26 = spop %1327 }
 0x31a   :  { %s1330_s29 = spop %1329  ;;  %s1256_s7 = sadd.f32 %s1150_s28, %s1045_s5 }
 0x31b   :  { %s1209_s27 = sadd.f32 %s1328_s26, %s1186_s24 }
 0x31d   :  { %s1232_s3 = sadd.f32 %s1330_s29, %s1209_s27 }
 0x31e   :  { %s1332_s4 = spop %1331 }
 0x31f   :  { %s1255_s6 = sadd.f32 %s1332_s4, %s1232_s3 }
 0x321   :  { %s1257_s8 = smul.f32 2.0, %s1255_s6 }
 0x323   :  { %s1258_s14 = ssub.f32 %s1256_s7, %s1257_s8 }
 0x325   :  { %s1267_s15 = smul.f32 %s1556_s30, %s1258_s14 }
 0x327   :  { %1269 = sst [smem:[#allocation12]] %s1267_s15 }
 0x328   :  { %1278 = dma.smem_to_hbm %s1453_s12, 16, %s1276_s11, [#allocation9]  }
 0x329   :  { %1444 = dma.done.wait [#allocation9], 16  }
 0x32a   :  { %1445 = vsyncadd [#allocation9], 4294967280 }
 0x32b   :  { %1283 = sfence }
 0x32c   :  { %1284 = vsyncpa [#allocation8], 1 }
 0x32d   :  { %1285 = vsyncpa [#allocation11], 1 }
 0x32e   :  { %1286 = vsyncpa [#allocation9], 1 }

</bundles_post_ra>
